<compile_context>
chip_gen: v5e
topology: v5e:2x2
jax: 0.10.0
libtpu: 0.0.40
codegen_flags: <defaults>
</compile_context>

<pallas_src>
import jax
import jax.numpy as jnp
from jax.experimental import pallas as pl
from jax.experimental.pallas import tpu as pltpu


def _round_up(x, m):
    return (x + m - 1) // m * m


def _vmem_limit(double_buffered_block_bytes):
    # Generous headroom over the real per-step need, capped so it stays legal on v7x.
    return int(min(48 * 1024 * 1024, max(16 * 1024 * 1024, 4 * double_buffered_block_bytes)))


# ---------------- kernel A: fused fc projection + per-node attention scores ----------------

def _fc_attn_kernel(h_ref, w_ref, slab_ref):
    # Single lane-dense MXU pass (bf16 operands, f32 accumulation):
    #   slab = h @ [W^T | W^T.a_src | W^T.a_dst | 0]  ->  [tile, 128]
    slab_ref[...] = jnp.dot(h_ref[...], w_ref[...], preferred_element_type=jnp.float32)


def fc_attn_forward(h_bf16, w_comb_bf16, *, tile):
    n_pad, in_dim = h_bf16.shape
    slab_w = w_comb_bf16.shape[1]
    block_bytes = 2 * (tile * in_dim * 2 + in_dim * slab_w * 2 + tile * slab_w * 4)
    cost = pl.CostEstimate(
        flops=2 * n_pad * in_dim * slab_w,
        transcendentals=0,
        bytes_accessed=2 * n_pad * in_dim + 2 * in_dim * slab_w + 4 * n_pad * slab_w,
    )
    return pl.pallas_call(
        _fc_attn_kernel,
        grid=(n_pad // tile,),
        in_specs=[
            pl.BlockSpec((tile, in_dim), lambda i: (i, 0)),
            pl.BlockSpec((in_dim, slab_w), lambda i: (0, 0)),
        ],
        out_specs=pl.BlockSpec((tile, slab_w), lambda i: (i, 0)),
        out_shape=jax.ShapeDtypeStruct((n_pad, slab_w), jnp.float32),
        compiler_params=pltpu.CompilerParams(
            dimension_semantics=("parallel",),
            vmem_limit_bytes=_vmem_limit(block_bytes),
        ),
        cost_estimate=cost,
    )(h_bf16, w_comb_bf16)


# -------- kernel B: masked edge softmax + alpha-weighted reduce over the K mailbox --------

def _gat_reduce_kernel(e_ref, mask_ref, zm_ref, out_ref):
    d = out_ref.shape[1]
    k_slots = e_ref.shape[1]

    # attention logits for this tile of dst nodes (already a_src.z_j + a_dst.z_i)
    e = e_ref[...]                                          # [T, K] f32
    e = jnp.where(e > 0, e, 0.01 * e)                       # leaky_relu, slope 0.01
    mask = mask_ref[...]                                    # [T, K] float {0,1}
    e = jnp.where(mask > 0, e, jnp.float32(-1000.0))        # padded slots -> no edge

    # masked softmax over the K mailbox slots (all f32)
    m = jnp.max(e, axis=1, keepdims=True)
    p = jnp.exp(e - m)
    denom = jnp.sum(p, axis=1, keepdims=True)
    alpha = p * pl.reciprocal(denom, approx=True)           # divide on the EUP slot
    alpha = alpha * mask                                    # exact zero on padded slots

    # alpha-weighted sum over K gathered src rows: O(T*K*D) VPU work, K static -> unrolled
    acc = jnp.zeros((alpha.shape[0], d), jnp.float32)
    for k in range(k_slots):
        zk = zm_ref[:, k * d:(k + 1) * d].astype(jnp.float32)   # [T, D] bf16 -> f32
        acc = acc + alpha[:, k:k + 1] * zk
    out_ref[...] = acc


def gat_reduce_forward(e_logits, mask, zm2, d, *, tile):
    n_pad, k = e_logits.shape
    kd = zm2.shape[1]
    block_bytes = 2 * (2 * tile * k * 4 + tile * kd * 2 + tile * d * 4)
    cost = pl.CostEstimate(
        flops=n_pad * k * (2 * d + 10),
        transcendentals=n_pad * (k + 1),
        bytes_accessed=8 * n_pad * k + 2 * n_pad * kd + 4 * n_pad * d,
    )
    return pl.pallas_call(
        _gat_reduce_kernel,
        grid=(n_pad // tile,),
        in_specs=[
            pl.BlockSpec((tile, k), lambda i: (i, 0)),      # per-edge logits
            pl.BlockSpec((tile, k), lambda i: (i, 0)),      # edge mask
            pl.BlockSpec((tile, kd), lambda i: (i, 0)),     # bf16 z mailbox, lane-dense
        ],
        out_specs=pl.BlockSpec((tile, d), lambda i: (i, 0)),
        out_shape=jax.ShapeDtypeStruct((n_pad, d), jnp.float32),
        compiler_params=pltpu.CompilerParams(
            dimension_semantics=("parallel",),
            vmem_limit_bytes=_vmem_limit(block_bytes),
        ),
        cost_estimate=cost,
    )(e_logits, mask, zm2)


# ---------------- wrapper ----------------

def npat_forward(h, nbr_idx, edge_mask, w_fc, a_attn):
    """NPATLayer forward.  h:[N,in_dim], nbr_idx:[N,K] int32, edge_mask:[N,K] bool."""
    n, in_dim = h.shape
    d = w_fc.shape[0]
    k = nbr_idx.shape[1]

    # Tiles: 256-512 rows amortize the ~0.35us/step pipeline overhead; padding to an
    # even multiple of the tile guarantees >=2 (and an even number of) grid steps so
    # the "parallel" axis splits across both v7x TensorCores.
    tile = 512 if n >= 4096 else 256
    n_pad = _round_up(max(n, 2 * tile), 2 * tile)

    # Combined weight for one lane-dense MXU pass:  slab = h @ [W^T | W^T.a_src | W^T.a_dst | 0]
    slab_w = _round_up(d + 2, 128)
    a_src = a_attn[0, :d]
    a_dst = a_attn[0, d:]
    w_comb = jnp.zeros((in_dim, slab_w), jnp.float32)
    w_comb = w_comb.at[:, :d].set(w_fc.T)
    w_comb = w_comb.at[:, d].set(w_fc.T @ a_src)
    w_comb = w_comb.at[:, d + 1].set(w_fc.T @ a_dst)

    h_pad = jnp.zeros((n_pad, in_dim), jnp.bfloat16).at[:n].set(h.astype(jnp.bfloat16))
    nbr_pad = jnp.zeros((n_pad, k), jnp.int32).at[:n].set(nbr_idx)
    mask_pad = jnp.zeros((n_pad, k), jnp.float32).at[:n].set(edge_mask.astype(jnp.float32))

    # kernel A: z = fc(h) plus per-node src/dst attention scores, one 128-wide f32 slab
    slab = fc_attn_forward(h_pad, w_comb.astype(jnp.bfloat16), tile=tile)
    z = slab[:, :d]
    s_src = slab[:, d]
    s_dst = slab[:, d + 1]

    # glue (XLA): per-edge scalar logits and the bf16 K-row z mailbox gather.
    # Duplicate src indices in a row are naturally summed by the weighted K-sum.
    e_logits = jnp.take(s_src, nbr_pad.reshape(-1), axis=0).reshape(n_pad, k) + s_dst[:, None]
    zm2 = jnp.take(z.astype(jnp.bfloat16), nbr_pad, axis=0).reshape(n_pad, k * d)

    out = gat_reduce_forward(e_logits, mask_pad, zm2, d, tile=tile)
    return out[:n]   # == h[snode_id]


# ---------------- pure-JAX reference (module semantics, f32) ----------------

def reference_forward(h, nbr_idx, edge_mask, w_fc, a_attn):
    d = w_fc.shape[0]
    z = h @ w_fc.T
    z_mail = jnp.take(z, nbr_idx, axis=0)                           # [N, K, D]
    e = z_mail @ a_attn[0, :d] + (z @ a_attn[0, d:])[:, None]       # concat attention
    e = jax.nn.leaky_relu(e, negative_slope=0.01)
    e = jnp.where(edge_mask, e, -1000.0)
    alpha = jax.nn.softmax(e, axis=1)
    z_mail = jnp.where(edge_mask[:, :, None], z_mail, 0.0)
    return jnp.sum(alpha[:, :, None] * z_mail, axis=1)


# ---------------- main ----------------

if __name__ == "__main__":
    N, K = 16, 4                       # snodes, padded max in-degree
    in_dim, out_dim = 32, 32

    key = jax.random.PRNGKey(0)
    k1, k2, k3, k4, k5 = jax.random.split(key, 5)

    h = jax.random.normal(k1, (N, in_dim), jnp.float32)
    nbr_idx = jax.random.randint(k2, (N, K), 0, N, dtype=jnp.int32)
    edge_mask = jax.random.bernoulli(k3, 0.75, (N, K))
    edge_mask = edge_mask.at[:, 0].set(True)       # every dst has >= 1 real in-edge

    # parameters (shapes from __init__; bias-free linears)
    w_fc = 0.2 * jax.random.normal(k4, (out_dim, in_dim), jnp.float32)      # fc.weight
    a_attn = 0.2 * jax.random.normal(k5, (1, 2 * out_dim), jnp.float32)     # attn_fc.weight

    out = jax.jit(npat_forward)(h, nbr_idx, edge_mask, w_fc, a_attn)
    out = jax.block_until_ready(out)

    ref = reference_forward(h, nbr_idx, edge_mask, w_fc, a_attn)
    assert out.shape == (N, out_dim)
    # tolerance covers bf16 MXU operands / bf16 z mailbox and the approximate EUP
    # reciprocal in the softmax normalisation (reference is pure f32)
    assert jnp.allclose(out, ref, atol=5e-2, rtol=5e-2), "mismatch vs pure-JAX reference"

    print("KERNEL_OK")
</pallas_src>

<mosaic_0001>
module attributes {stable_mosaic.version = 11 : i64} {
  func.func @_fc_attn_kernel(%arg0: i32, %arg1: memref<256x32xbf16, #tpu.memory_space<vmem>>, %arg2: memref<32x128xbf16, #tpu.memory_space<vmem>>, %arg3: memref<256x128xf32, #tpu.memory_space<vmem>>) attributes {dimension_semantics = [#tpu.dimension_semantics<parallel>], iteration_bounds = array<i64: 2>, scalar_prefetch = 0 : i64, scratch_operands = 0 : i64, tpu.core_type = #tpu.core_type<tc>, window_params = [{transform_indices = @transform_0, window_bounds = array<i64: 256, 32>}, {pipeline_mode = #tpu.pipeline_mode<synchronous>, transform_indices = @transform_1, window_bounds = array<i64: 32, 128>}, {transform_indices = @transform_2, window_bounds = array<i64: 256, 128>}]} {
    %c0 = arith.constant 0 : index
    %c0_0 = arith.constant 0 : index
    %0 = vector.load %arg1[%c0, %c0_0] : memref<256x32xbf16, #tpu.memory_space<vmem>>, vector<256x32xbf16>
    %c0_1 = arith.constant 0 : index
    %c0_2 = arith.constant 0 : index
    %1 = vector.load %arg2[%c0_1, %c0_2] : memref<32x128xbf16, #tpu.memory_space<vmem>>, vector<32x128xbf16>
    %cst = arith.constant dense<0.000000e+00> : vector<256x128xf32>
    %2 = tpu.matmul %0, %1, %cst {dimension_numbers = #tpu.dot_dimension_numbers<[1], [0], [0], [1], [0, 0, 1, 1], [], []>} : vector<256x32xbf16>, vector<32x128xbf16>, vector<256x128xf32> -> vector<256x128xf32>
    %c0_3 = arith.constant 0 : index
    %c0_4 = arith.constant 0 : index
    %3 = vector.load %arg3[%c0_3, %c0_4] : memref<256x128xf32, #tpu.memory_space<vmem>>, vector<256x128xf32>
    tpu.vector_store %arg3[%c0_3, %c0_4], %2 {strides = array<i32>} : memref<256x128xf32, #tpu.memory_space<vmem>>, vector<256x128xf32>,
    return
  }
  func.func @transform_0(%arg0: i32) -> (i32, i32) {
    %c0_i32 = arith.constant 0 : i32
    %c0_i32_0 = arith.constant 0 : i32
    return %arg0, %c0_i32 : i32, i32
  }
  func.func @transform_1(%arg0: i32) -> (i32, i32) {
    %c0_i32 = arith.constant 0 : i32
    %c0_i32_0 = arith.constant 0 : i32
    %c0_i32_1 = arith.constant 0 : i32
    return %c0_i32, %c0_i32_0 : i32, i32
  }
  func.func @transform_2(%arg0: i32) -> (i32, i32) {
    %c0_i32 = arith.constant 0 : i32
    %c0_i32_0 = arith.constant 0 : i32
    return %arg0, %c0_i32 : i32, i32
  }
}

module attributes {stable_mosaic.version = 11 : i64} {
  func.func @_gat_reduce_kernel(%arg0: i32, %arg1: memref<256x4xf32, #tpu.memory_space<vmem>>, %arg2: memref<256x4xf32, #tpu.memory_space<vmem>>, %arg3: memref<256x128xbf16, #tpu.memory_space<vmem>>, %arg4: memref<256x32xf32, #tpu.memory_space<vmem>>) attributes {dimension_semantics = [#tpu.dimension_semantics<parallel>], iteration_bounds = array<i64: 2>, scalar_prefetch = 0 : i64, scratch_operands = 0 : i64, tpu.core_type = #tpu.core_type<tc>, window_params = [{transform_indices = @transform_0, window_bounds = array<i64: 256, 4>}, {transform_indices = @transform_1, window_bounds = array<i64: 256, 4>}, {transform_indices = @transform_2, window_bounds = array<i64: 256, 128>}, {transform_indices = @transform_3, window_bounds = array<i64: 256, 32>}]} {
    %c0 = arith.constant 0 : index
    %c0_0 = arith.constant 0 : index
    %0 = vector.load %arg1[%c0, %c0_0] : memref<256x4xf32, #tpu.memory_space<vmem>>, vector<256x4xf32>
    %cst = arith.constant 0.000000e+00 : f32
    %1 = vector.broadcast %cst : f32 to vector<256x4xf32>
    %2 = arith.cmpf ogt, %0, %1 : vector<256x4xf32>
    %cst_1 = arith.constant 0.00999999977 : f32
    %3 = vector.broadcast %cst_1 : f32 to vector<256x4xf32>
    %4 = arith.mulf %3, %0 : vector<256x4xf32>
    %5 = arith.select %2, %0, %4 : vector<256x4xi1>, vector<256x4xf32>
    %c0_2 = arith.constant 0 : index
    %c0_3 = arith.constant 0 : index
    %6 = vector.load %arg2[%c0_2, %c0_3] : memref<256x4xf32, #tpu.memory_space<vmem>>, vector<256x4xf32>
    %cst_4 = arith.constant 0.000000e+00 : f32
    %7 = vector.broadcast %cst_4 : f32 to vector<256x4xf32>
    %8 = arith.cmpf ogt, %6, %7 : vector<256x4xf32>
    %cst_5 = arith.constant -1.000000e+03 : f32
    %9 = vector.broadcast %cst_5 : f32 to vector<256x4xf32>
    %10 = arith.select %8, %5, %9 : vector<256x4xi1>, vector<256x4xf32>
    %cst_6 = arith.constant dense<0xFF800000> : vector<256xf32>
    %11 = vector.multi_reduction <maximumf>, %10, %cst_6 [1] : vector<256x4xf32> to vector<256xf32>
    %12 = vector.shape_cast %11 : vector<256xf32> to vector<256x1xf32>
    %13 = vector.broadcast %12 : vector<256x1xf32> to vector<256x4xf32>
    %14 = arith.subf %10, %13 : vector<256x4xf32>
    %15 = math.exp %14 : vector<256x4xf32>
    %cst_7 = arith.constant dense<0.000000e+00> : vector<256xf32>
    %16 = vector.multi_reduction <add>, %15, %cst_7 [1] : vector<256x4xf32> to vector<256xf32>
    %17 = vector.shape_cast %16 : vector<256xf32> to vector<256x1xf32>
    %18 = tpu.reciprocal %17 {approx = true} : vector<256x1xf32> -> vector<256x1xf32>
    %19 = vector.broadcast %18 : vector<256x1xf32> to vector<256x4xf32>
    %20 = arith.mulf %15, %19 : vector<256x4xf32>
    %21 = arith.mulf %20, %6 : vector<256x4xf32>
    %cst_8 = arith.constant 0.000000e+00 : f32
    %22 = vector.broadcast %cst_8 : f32 to vector<256x32xf32>
    %c0_9 = arith.constant 0 : index
    %c0_10 = arith.constant 0 : index
    %23 = vector.load %arg3[%c0_9, %c0_10] : memref<256x128xbf16, #tpu.memory_space<vmem>>, vector<256x32xbf16>
    %24 = arith.extf %23 : vector<256x32xbf16> to vector<256x32xf32>
    %25 = vector.extract_strided_slice %21 {offsets = [0, 0], sizes = [256, 1], strides = [1, 1]} : vector<256x4xf32> to vector<256x1xf32>
    %26 = vector.broadcast %25 : vector<256x1xf32> to vector<256x32xf32>
    %27 = arith.mulf %26, %24 : vector<256x32xf32>
    %28 = arith.addf %22, %27 : vector<256x32xf32>
    %c0_11 = arith.constant 0 : index
    %c32 = arith.constant 32 : index
    %29 = vector.load %arg3[%c0_11, %c32] : memref<256x128xbf16, #tpu.memory_space<vmem>>, vector<256x32xbf16>
    %30 = arith.extf %29 : vector<256x32xbf16> to vector<256x32xf32>
    %31 = vector.extract_strided_slice %21 {offsets = [0, 1], sizes = [256, 1], strides = [1, 1]} : vector<256x4xf32> to vector<256x1xf32>
    %32 = vector.broadcast %31 : vector<256x1xf32> to vector<256x32xf32>
    %33 = arith.mulf %32, %30 : vector<256x32xf32>
    %34 = arith.addf %28, %33 : vector<256x32xf32>
    %c0_12 = arith.constant 0 : index
    %c64 = arith.constant 64 : index
    %35 = vector.load %arg3[%c0_12, %c64] : memref<256x128xbf16, #tpu.memory_space<vmem>>, vector<256x32xbf16>
    %36 = arith.extf %35 : vector<256x32xbf16> to vector<256x32xf32>
    %37 = vector.extract_strided_slice %21 {offsets = [0, 2], sizes = [256, 1], strides = [1, 1]} : vector<256x4xf32> to vector<256x1xf32>
    %38 = vector.broadcast %37 : vector<256x1xf32> to vector<256x32xf32>
    %39 = arith.mulf %38, %36 : vector<256x32xf32>
    %40 = arith.addf %34, %39 : vector<256x32xf32>
    %c0_13 = arith.constant 0 : index
    %c96 = arith.constant 96 : index
    %41 = vector.load %arg3[%c0_13, %c96] : memref<256x128xbf16, #tpu.memory_space<vmem>>, vector<256x32xbf16>
    %42 = arith.extf %41 : vector<256x32xbf16> to vector<256x32xf32>
    %43 = vector.extract_strided_slice %21 {offsets = [0, 3], sizes = [256, 1], strides = [1, 1]} : vector<256x4xf32> to vector<256x1xf32>
    %44 = vector.broadcast %43 : vector<256x1xf32> to vector<256x32xf32>
    %45 = arith.mulf %44, %42 : vector<256x32xf32>
    %46 = arith.addf %40, %45 : vector<256x32xf32>
    %c0_14 = arith.constant 0 : index
    %c0_15 = arith.constant 0 : index
    %47 = vector.load %arg4[%c0_14, %c0_15] : memref<256x32xf32, #tpu.memory_space<vmem>>, vector<256x32xf32>
    tpu.vector_store %arg4[%c0_14, %c0_15], %46 {strides = array<i32>} : memref<256x32xf32, #tpu.memory_space<vmem>>, vector<256x32xf32>,
    return
  }
  func.func @transform_0(%arg0: i32) -> (i32, i32) {
    %c0_i32 = arith.constant 0 : i32
    %c0_i32_0 = arith.constant 0 : i32
    return %arg0, %c0_i32 : i32, i32
  }
  func.func @transform_1(%arg0: i32) -> (i32, i32) {
    %c0_i32 = arith.constant 0 : i32
    %c0_i32_0 = arith.constant 0 : i32
    return %arg0, %c0_i32 : i32, i32
  }
  func.func @transform_2(%arg0: i32) -> (i32, i32) {
    %c0_i32 = arith.constant 0 : i32
    %c0_i32_0 = arith.constant 0 : i32
    return %arg0, %c0_i32 : i32, i32
  }
  func.func @transform_3(%arg0: i32) -> (i32, i32) {
    %c0_i32 = arith.constant 0 : i32
    %c0_i32_0 = arith.constant 0 : i32
    return %arg0, %c0_i32 : i32, i32
  }
}

</mosaic_0001>

<bundles_post_ra>
// kernel: npat_forward.2
= control target key start
LH: loop header
LB: loop body
LE: loop exit
PB: predicated region body
PF: predicated region fallthrough
CT: control target
= control target key end

     0   :  { %s656_s9 = smov 0   ;;  %s751_s0 = inlined_call_operand.vmem [shape: bf16[512,32], index: 0, kind: input, shape index: {}]   ;;  %s752_s1 = inlined_call_operand.vmem [shape: bf16[32,128], index: 1, kind: input, shape index: {}]   ;;  %s753_s2 = inlined_call_operand.vmem [shape: f32[512,128], index: 2, kind: output, shape index: {}]  }
   0x1 LB: > { %s502_s10 = sadd.s32 4294967295, %s639_s9   ;;  %p506_p0 = scmp.ge.s32.totalorder %s639_s9, 1  ;;  %s639_s9 = sphi %s656_s9, %s12_s9  }
   0x2   : > { %p113_p1 = scmp.lt.s32.totalorder %s639_s9, 3 }
   0x4   : > { %p114_p2 = pnand %p506_p0, %p113_p1 }
   0x5   : > { %s507_s13 = sshll.u32 (!%p114_p2), %s502_s10, 5 }
   0x6   : > { %117 = sbr.rel (%p114_p2) target bundleno = 210 (0xd2), region = 28  ;;  %p136_p3 = scmp.lt.s32.totalorder (!%p114_p2), %s507_s13, 63 }
   0xb   : > { %v618_v0 = vld [vmem:[%s752_s1 + $0x8] sm:$0xff]  ;;  %v617_v1 = vld [vmem:[%s752_s1] sm:$0xff]  ;;  %s755_s13 = smov (!%p136_p3, %s507_s13), 63  ;;  %vm276_vm0 = vcmask 261120  }
   0xc   : > { %331 = vmatpush.bf16.msra.mxu0 %v618_v0  ;;  %619 = vmatpush.bf16.msra.mxu1 %v618_v0  ;;  %s508_s16 = sshll.u32 %s755_s13, 2  ;;  %s510_s20 = sshll.u32 %s755_s13, 3 }
   0xd   : > { %620 = vmatpush.bf16.msra.mxu2 %v618_v0  ;;  %621 = vmatpush.bf16.msra.mxu3 %v618_v0  ;;  %s676_s19 = scalar_lea.vmem %s751_s0, %s508_s16  ;;  %s714_s23 = scalar_lea.vmem %s753_s2, %s510_s20 }
   0xe   : > { %v601_v2 = vld [vmem:[%s676_s19] sm:$0xff]  ;;  %v602_v6 = vld [vmem:[%s676_s19 + $0x8] sm:$0xff]  ;;  %v603_v10 = vld [vmem:[%s676_s19 + $0x10] sm:$0xff] }
   0xf   : > { %v605_v3 = vld [vmem:[%s676_s19 + $0x20] sm:$0xff]  ;;  %v606_v7 = vld [vmem:[%s676_s19 + $0x28] sm:$0xff]  ;;  %v607_v11 = vld [vmem:[%s676_s19 + $0x30] sm:$0xff] }
  0x10   : > { %332 = vmatpush.bf16.msra.mxu0 %v617_v1  ;;  %622 = vmatpush.bf16.msra.mxu1 %v617_v1  ;;  %v609_v4 = vld [vmem:[%s676_s19 + $0x40] sm:$0xff]  ;;  %v610_v8 = vld [vmem:[%s676_s19 + $0x48] sm:$0xff]  ;;  %v611_v12 = vld [vmem:[%s676_s19 + $0x50] sm:$0xff] }
  0x11   : > { %623 = vmatpush.bf16.msra.mxu2 %v617_v1  ;;  %624 = vmatpush.bf16.msra.mxu3 %v617_v1  ;;  %v613_v5 = vld [vmem:[%s676_s19 + $0x60] sm:$0xff]  ;;  %v614_v9 = vld [vmem:[%s676_s19 + $0x68] sm:$0xff]  ;;  %v615_v13 = vld [vmem:[%s676_s19 + $0x70] sm:$0xff] }
  0x12   : > { %v604_v14 = vld [vmem:[%s676_s19 + $0x18] sm:$0xff] }
  0x13   : > { %583 = vmatmul.msk.bf16.vlgmr.msra.gmra.mxu0 %vm276_vm0, %v601_v2  ;;  %587 = vmatmul.msk.bf16.vlgmr.msra.gmra.mxu1 %vm276_vm0, %v605_v3  ;;  %v608_v15 = vld [vmem:[%s676_s19 + $0x38] sm:$0xff] }
  0x14   : > { %591 = vmatmul.msk.bf16.vlgmr.msra.gmra.mxu2 %vm276_vm0, %v609_v4  ;;  %595 = vmatmul.msk.bf16.vlgmr.msra.gmra.mxu3 %vm276_vm0, %v613_v5  ;;  %v612_v16 = vld [vmem:[%s676_s19 + $0x58] sm:$0xff] }
  0x15   : > { %v616_v17 = vld [vmem:[%s676_s19 + $0x78] sm:$0xff] }
  0x23   : > { %584 = vmatmul.msk.bf16.gmra.mxu0 %vm276_vm0, %v602_v6  ;;  %588 = vmatmul.msk.bf16.gmra.mxu1 %vm276_vm0, %v606_v7 }
  0x24   : > { %592 = vmatmul.msk.bf16.gmra.mxu2 %vm276_vm0, %v610_v8  ;;  %596 = vmatmul.msk.bf16.gmra.mxu3 %vm276_vm0, %v614_v9 }
  0x33   : > { %585 = vmatmul.msk.bf16.gmra.mxu0 %vm276_vm0, %v603_v10  ;;  %589 = vmatmul.msk.bf16.gmra.mxu1 %vm276_vm0, %v607_v11 }
  0x34   : > { %593 = vmatmul.msk.bf16.gmra.mxu2 %vm276_vm0, %v611_v12  ;;  %597 = vmatmul.msk.bf16.gmra.mxu3 %vm276_vm0, %v615_v13 }
  0x43   : > { %586 = vmatmul.msk.bf16.gmra.mxu0 %vm276_vm0, %v604_v14  ;;  %590 = vmatmul.msk.bf16.gmra.mxu1 %vm276_vm0, %v608_v15 }
  0x44   : > { %594 = vmatmul.msk.bf16.gmra.mxu2 %vm276_vm0, %v612_v16  ;;  %598 = vmatmul.msk.bf16.gmra.mxu3 %vm276_vm0, %v616_v17 }
  0x90   : > { %v334_v18 = vpop.f32.mrf.mxu0  ;;  %v354_v19 = vpop.f32.mrf.mxu1 }
  0x91   : > { %414 = vst [vmem:[%s714_s23] sm:$0xff] %v334_v18 }
  0x92   : > { %422 = vst [vmem:[%s714_s23 + $0x40] sm:$0xff] %v354_v19 }
  0x97   : > { %v374_v20 = vpop.f32.mrf.mxu2  ;;  %v394_v21 = vpop.f32.mrf.mxu3 }
  0x98   : > { %430 = vst [vmem:[%s714_s23 + $0x80] sm:$0xff] %v374_v20  ;;  %v336_v22 = vpop.f32.mrf.mxu0  ;;  %v356_v23 = vpop.f32.mrf.mxu1 }
  0x99   : > { %438 = vst [vmem:[%s714_s23 + $0xc0] sm:$0xff] %v394_v21 }
  0x9a   : > { %415 = vst [vmem:[%s714_s23 + $0x8] sm:$0xff] %v336_v22 }
  0x9b   : > { %423 = vst [vmem:[%s714_s23 + $0x48] sm:$0xff] %v356_v23 }
  0x9f   : > { %v376_v24 = vpop.f32.mrf.mxu2  ;;  %v396_v25 = vpop.f32.mrf.mxu3 }
  0xa0   : > { %431 = vst [vmem:[%s714_s23 + $0x88] sm:$0xff] %v376_v24  ;;  %v339_v26 = vpop.f32.mrf.mxu0  ;;  %v359_v27 = vpop.f32.mrf.mxu1 }
  0xa1   : > { %439 = vst [vmem:[%s714_s23 + $0xc8] sm:$0xff] %v396_v25 }
  0xa2   : > { %416 = vst [vmem:[%s714_s23 + $0x10] sm:$0xff] %v339_v26 }
  0xa3   : > { %424 = vst [vmem:[%s714_s23 + $0x50] sm:$0xff] %v359_v27 }
  0xa7   : > { %v379_v28 = vpop.f32.mrf.mxu2  ;;  %v399_v29 = vpop.f32.mrf.mxu3 }
  0xa8   : > { %432 = vst [vmem:[%s714_s23 + $0x90] sm:$0xff] %v379_v28  ;;  %v341_v30 = vpop.f32.mrf.mxu0  ;;  %v361_v31 = vpop.f32.mrf.mxu1 }
  0xa9   : > { %440 = vst [vmem:[%s714_s23 + $0xd0] sm:$0xff] %v399_v29 }
  0xaa   : > { %417 = vst [vmem:[%s714_s23 + $0x18] sm:$0xff] %v341_v30 }
  0xab   : > { %425 = vst [vmem:[%s714_s23 + $0x58] sm:$0xff] %v361_v31 }
  0xaf   : > { %v381_v32 = vpop.f32.mrf.mxu2  ;;  %v401_v33 = vpop.f32.mrf.mxu3 }
  0xb0   : > { %433 = vst [vmem:[%s714_s23 + $0x98] sm:$0xff] %v381_v32  ;;  %v344_v34 = vpop.f32.mrf.mxu0  ;;  %v364_v35 = vpop.f32.mrf.mxu1 }
  0xb1   : > { %441 = vst [vmem:[%s714_s23 + $0xd8] sm:$0xff] %v401_v33 }
  0xb2   : > { %418 = vst [vmem:[%s714_s23 + $0x20] sm:$0xff] %v344_v34 }
  0xb3   : > { %426 = vst [vmem:[%s714_s23 + $0x60] sm:$0xff] %v364_v35 }
  0xb7   : > { %v384_v36 = vpop.f32.mrf.mxu2  ;;  %v404_v37 = vpop.f32.mrf.mxu3 }
  0xb8   : > { %434 = vst [vmem:[%s714_s23 + $0xa0] sm:$0xff] %v384_v36  ;;  %v346_v38 = vpop.f32.mrf.mxu0  ;;  %v366_v39 = vpop.f32.mrf.mxu1 }
  0xb9   : > { %442 = vst [vmem:[%s714_s23 + $0xe0] sm:$0xff] %v404_v37 }
  0xba   : > { %419 = vst [vmem:[%s714_s23 + $0x28] sm:$0xff] %v346_v38 }
  0xbb   : > { %427 = vst [vmem:[%s714_s23 + $0x68] sm:$0xff] %v366_v39 }
  0xbf   : > { %v386_v40 = vpop.f32.mrf.mxu2  ;;  %v406_v41 = vpop.f32.mrf.mxu3 }
  0xc0   : > { %435 = vst [vmem:[%s714_s23 + $0xa8] sm:$0xff] %v386_v40  ;;  %v349_v42 = vpop.f32.mrf.mxu0  ;;  %v369_v43 = vpop.f32.mrf.mxu1 }
  0xc1   : > { %443 = vst [vmem:[%s714_s23 + $0xe8] sm:$0xff] %v406_v41 }
  0xc2   : > { %420 = vst [vmem:[%s714_s23 + $0x30] sm:$0xff] %v349_v42 }
  0xc3   : > { %428 = vst [vmem:[%s714_s23 + $0x70] sm:$0xff] %v369_v43 }
  0xc7   : > { %v389_v44 = vpop.f32.mrf.mxu2  ;;  %v409_v45 = vpop.f32.mrf.mxu3 }
  0xc8   : > { %436 = vst [vmem:[%s714_s23 + $0xb0] sm:$0xff] %v389_v44  ;;  %v351_v46 = vpop.f32.mrf.mxu0  ;;  %v371_v47 = vpop.f32.mrf.mxu1 }
  0xc9   : > { %444 = vst [vmem:[%s714_s23 + $0xf0] sm:$0xff] %v409_v45 }
  0xca   : > { %421 = vst [vmem:[%s714_s23 + $0x38] sm:$0xff] %v351_v46 }
  0xcb   : > { %429 = vst [vmem:[%s714_s23 + $0x78] sm:$0xff] %v371_v47 }
  0xcf   : > { %v391_v48 = vpop.f32.mrf.mxu2  ;;  %v411_v49 = vpop.f32.mrf.mxu3 }
  0xd0   : > { %437 = vst [vmem:[%s714_s23 + $0xb8] sm:$0xff] %v391_v48 }
  0xd1   : > { %445 = vst [vmem:[%s714_s23 + $0xf8] sm:$0xff] %v411_v49 }
  0xd2 PF: > { %s12_s9 = sadd.s32 1, %s639_s9  }
  0xd3   : > { %p9_p4 = scmp.ge.s32.totalorder %s12_s9, 4  }
  0xd5   :  { %11 = sbr.rel (!%p9_p4) target bundleno = 1 (0x1), region = 58 }

// kernel: npat_forward.3
= control target key start
LH: loop header
LB: loop body
LE: loop exit
PB: predicated region body
PF: predicated region fallthrough
CT: control target
= control target key end

     0   :  { %s2482_s12 = smov 0   ;;  %s3854_s0 = inlined_call_operand.vmem [shape: f32[512,4], index: 0, kind: input, shape index: {}]   ;;  %s3855_s1 = inlined_call_operand.vmem [shape: f32[512,4], index: 1, kind: input, shape index: {}]   ;;  %s3856_s2 = inlined_call_operand.vmem [shape: bf16[512,128], index: 2, kind: input, shape index: {}]   ;;  %s3857_s3 = inlined_call_operand.vmem [shape: f32[512,32], index: 3, kind: output, shape index: {}]  }
   0x1 LB: > { %s2188_s13 = sadd.s32 4294967295, %s2453_s12   ;;  %p2192_p0 = scmp.ge.s32.totalorder %s2453_s12, 1  ;;  %s2453_s12 = sphi %s2482_s12, %s13_s12  }
   0x2   : > { %p160_p1 = scmp.lt.s32.totalorder %s2453_s12, 3 }
   0x4   : > { %p161_p2 = pnand %p2192_p0, %p160_p1 }
   0x6   : > { %164 = sbr.rel (%p161_p2) target bundleno = 1095 (0x447), region = 32 }
   0xb   : > { %s2193_s14 = sshll.u32 %s2188_s13, 5  ;;  %vm442_vm0 = vcmask 31744   ;;  %s2457_s26 = smov 96  }
   0xc   : > { %p195_p3 = scmp.lt.s32.totalorder %s2193_s14, 63  ;;  %s2459_s27 = smov 64  }
   0xd   : > { %s2461_s28 = smov 32  }
   0xe   : > { %s4126_s14 = smov (!%p195_p3, %s2193_s14), 63 }
   0xf   : > { %s2493_s15 = sshll.u32 %s4126_s14, 3  ;;  %s2198_s22 = sshll.u32 %s4126_s14, 2 }
  0x10   : > { %s2499_s18 = scalar_lea.vmem %s3854_s0, %s2493_s15  ;;  %s2505_s21 = scalar_lea.vmem %s3855_s1, %s2493_s15 }
  0x11   : > { %v222_v0 = vld [vmem:[%s2499_s18 + $0x20] sm:$0xff]  ;;  %v220_v2 = vld [vmem:[%s2499_s18 + $0x10] sm:$0xff]  ;;  %v223_v8 = vld [vmem:[%s2499_s18 + $0x28] sm:$0xff]  ;;  %s3181_s25 = scalar_lea.vmem %s3856_s2, %s2198_s22  ;;  %s3712_s4 = scalar_lea.vmem %s3857_s3, %s2493_s15 }
  0x12   : > { %v350_v1 = vld [vmem:[%s2505_s21 + $0x20] sm:$0xff]  ;;  %vm254_vm1 = vcmp.gt.f32.partialorder %v222_v0, 0.0  ;;  %v286_v3 = vmul.f32 0.01, %v222_v0  ;;  %vm252_vm3 = vcmp.gt.f32.partialorder %v220_v2, 0.0  ;;  %v348_v4 = vld [vmem:[%s2505_s21 + $0x10] sm:$0xff] }
  0x13   : > { %vm382_vm2 = vcmp.gt.f32.partialorder %v350_v1, 0.0  ;;  %v284_v5 = vmul.f32 0.01, %v220_v2  ;;  %vm380_vm4 = vcmp.gt.f32.partialorder %v348_v4, 0.0  ;;  %v218_v6 = vld [vmem:[%s2499_s18] sm:$0xff]  ;;  %v351_v11 = vld [vmem:[%s2505_s21 + $0x28] sm:$0xff] }
  0x14   : > { %v346_v7 = vld [vmem:[%s2505_s21] sm:$0xff]  ;;  %v318_v9 = vsel %vm254_vm1, %v222_v0, %v286_v3  ;;  %vm250_vm5 = vcmp.gt.f32.partialorder %v218_v6, 0.0  ;;  %v282_v10 = vmul.f32 0.01, %v218_v6  ;;  %v221_v12 = vld [vmem:[%s2499_s18 + $0x18] sm:$0xff]  ;;  %vm255_vm7 = vcmp.gt.f32.partialorder %v223_v8, 0.0 }
  0x15   : > { %vm378_vm6 = vcmp.gt.f32.partialorder %v346_v7, 0.0  ;;  %v2516_v13 = vsel %vm382_vm2, %v318_v9, -1000.0  ;;  %v316_v14 = vsel %vm252_vm3, %v220_v2, %v284_v5  ;;  %v287_v15 = vmul.f32 0.01, %v223_v8  ;;  %v349_v16 = vld [vmem:[%s2505_s21 + $0x18] sm:$0xff]  ;;  %v219_v20 = vld [vmem:[%s2499_s18 + $0x8] sm:$0xff] }
  0x16   : > { %v455_v17 = vsel %vm442_vm0, %v2516_v13, -inf  ;;  %v2522_v18 = vsel %vm380_vm4, %v316_v14, -1000.0  ;;  %v314_v19 = vsel %vm250_vm5, %v218_v6, %v282_v10  ;;  %vm383_vm8 = vcmp.gt.f32.partialorder %v351_v11, 0.0  ;;  %v2526_v21 = vld [vmem:[%s2505_s21 + $0x8] sm:$0xff]  ;;  %v226_v25 = vld [vmem:[%s2499_s18 + $0x40] sm:$0xff]  ;;  %v224_v30 = vld [vmem:[%s2499_s18 + $0x30] sm:$0xff] }
  0x17   : > { %456 = vmax.xlane.f32.xlu2 %v455_v17  ;;  %v449_v22 = vsel %vm442_vm0, %v2522_v18, -inf  ;;  %v2531_v23 = vsel %vm378_vm6, %v314_v19, -1000.0  ;;  %v319_v24 = vsel %vm255_vm7, %v223_v8, %v287_v15  ;;  %vm253_vm9 = vcmp.gt.f32.partialorder %v221_v12, 0.0  ;;  %v354_v35 = vld [vmem:[%s2505_s21 + $0x40] sm:$0xff]  ;;  %v225_v39 = vld [vmem:[%s2499_s18 + $0x38] sm:$0xff]  ;;  %v2552_v42 = vld [vmem:[%s2505_s21 + $0x30] sm:$0xff] }
  0x18   : > { %450 = vmax.xlane.f32.xlu1 %v449_v22  ;;  %v443_v26 = vsel %vm442_vm0, %v2531_v23, -inf  ;;  %v285_v27 = vmul.f32 0.01, %v221_v12  ;;  %vm381_vm10 = vcmp.gt.f32.partialorder %v349_v16, 0.0  ;;  %v2536_v28 = vsel %vm383_vm8, %v319_v24, -1000.0  ;;  %v353_v40 = vld [vmem:[%s2505_s21 + $0x38] sm:$0xff] }
  0x19   : > { %444 = vmax.xlane.f32.xlu0 %v443_v26  ;;  %vm251_vm11 = vcmp.gt.f32.partialorder %v219_v20, 0.0  ;;  %v283_v29 = vmul.f32 0.01, %v219_v20  ;;  %vm379_vm12 = vcmp.gt.f32.partialorder %v2526_v21, 0.0  ;;  %v290_v32 = vmul.f32 0.01, %v226_v25 }
  0x1a   : > { %v317_v31 = vsel %vm253_vm9, %v221_v12, %v285_v27  ;;  %vm258_vm13 = vcmp.gt.f32.partialorder %v226_v25, 0.0  ;;  %v458_v36 = vsel %vm442_vm0, %v2536_v28, -inf  ;;  %v288_v38 = vmul.f32 0.01, %v224_v30  ;;  %v229_v45 = vld [vmem:[%s2499_s18 + $0x58] sm:$0xff]  ;;  %v227_v50 = vld [vmem:[%s2499_s18 + $0x48] sm:$0xff] }
  0x1b   : > { %v2540_v33 = vsel %vm381_vm10, %v317_v31, -1000.0  ;;  %v315_v34 = vsel %vm251_vm11, %v219_v20, %v283_v29  ;;  %vm256_vm14 = vcmp.gt.f32.partialorder %v224_v30, 0.0  ;;  %v322_v44 = vsel %vm258_vm13, %v226_v25, %v290_v32  ;;  %v228_v51 = vld [vmem:[%s2499_s18 + $0x50] sm:$0xff]  ;;  %v357_v55 = vld [vmem:[%s2505_s21 + $0x58] sm:$0xff]  ;;  %v2573_v61 = vld [vmem:[%s2505_s21 + $0x48] sm:$0xff] }
  0x1c   : > { %v2545_v37 = vsel %vm379_vm12, %v315_v34, -1000.0  ;;  %v452_v41 = vsel %vm442_vm0, %v2540_v33, -inf  ;;  %vm386_vm15 = vcmp.gt.f32.partialorder %v354_v35, 0.0  ;;  %vm257_vm1 = vcmp.gt.f32.partialorder %v225_v39, 0.0  ;;  %v356_v56 = vld [vmem:[%s2505_s21 + $0x50] sm:$0xff]  ;;  %v231_v3 = vld [vmem:[%s2499_s18 + $0x68] sm:$0xff] }
  0x1d   : > { %v446_v43 = vsel %vm442_vm0, %v2545_v37, -inf  ;;  %v289_v46 = vmul.f32 0.01, %v225_v39  ;;  %vm385_vm2 = vcmp.gt.f32.partialorder %v353_v40, 0.0  ;;  %v320_v47 = vsel %vm256_vm14, %v224_v30, %v288_v38  ;;  %v232_v0 = vld [vmem:[%s2499_s18 + $0x70] sm:$0xff]  ;;  %v230_v5 = vld [vmem:[%s2499_s18 + $0x60] sm:$0xff] }
  0x1e   : > { %vm384_vm3 = vcmp.gt.f32.partialorder %v2552_v42, 0.0  ;;  %v2558_v48 = vsel %vm386_vm15, %v322_v44, -1000.0  ;;  %v293_v52 = vmul.f32 0.01, %v229_v45  ;;  %vm261_vm4 = vcmp.gt.f32.partialorder %v229_v45, 0.0  ;;  %v360_v9 = vld [vmem:[%s2505_s21 + $0x70] sm:$0xff] }
  0x1f   : > { %459 = vmax.xlane.f32.xlu2 %v458_v36  ;;  %v321_v49 = vsel %vm257_vm1, %v225_v39, %v289_v46  ;;  %v2564_v54 = vsel %vm384_vm3, %v320_v47, -1000.0  ;;  %v467_v57 = vsel %vm442_vm0, %v2558_v48, -inf  ;;  %v291_v58 = vmul.f32 0.01, %v227_v50  ;;  %v2591_v14 = vld [vmem:[%s2505_s21 + $0x68] sm:$0xff]  ;;  %v2596_v16 = vld [vmem:[%s2505_s21 + $0x60] sm:$0xff] }
  0x20   : > { %453 = vmax.xlane.f32.xlu1 %v452_v41  ;;  %v2562_v53 = vsel %vm385_vm2, %v321_v49, -1000.0  ;;  %vm260_vm5 = vcmp.gt.f32.partialorder %v228_v51, 0.0  ;;  %v292_v59 = vmul.f32 0.01, %v228_v51  ;;  %vm259_vm6 = vcmp.gt.f32.partialorder %v227_v50, 0.0  ;;  %v235_v20 = vld [vmem:[%s2499_s18 + $0x88] sm:$0xff] }
  0x21   : > { %447 = vmax.xlane.f32.xlu0 %v446_v43  ;;  %v464_v60 = vsel %vm442_vm0, %v2562_v53, -inf  ;;  %v461_v62 = vsel %vm442_vm0, %v2564_v54, -inf  ;;  %v325_v63 = vsel %vm261_vm4, %v229_v45, %v293_v52  ;;  %vm389_vm7 = vcmp.gt.f32.partialorder %v357_v55, 0.0  ;;  %v234_v25 = vld [vmem:[%s2499_s18 + $0x80] sm:$0xff]  ;;  %v233_v27 = vld [vmem:[%s2499_s18 + $0x78] sm:$0xff]  ;;  %v2612_v32 = vld [vmem:[%s2505_s21 + $0x88] sm:$0xff] }
  0x22   : > { %v324_v1 = vsel %vm260_vm5, %v228_v51, %v292_v59  ;;  %vm388_vm8 = vcmp.gt.f32.partialorder %v356_v56, 0.0  ;;  %v323_v2 = vsel %vm259_vm6, %v227_v50, %v291_v58  ;;  %vm387_vm9 = vcmp.gt.f32.partialorder %v2573_v61, 0.0  ;;  %v2617_v38 = vld [vmem:[%s2505_s21 + $0x80] sm:$0xff]  ;;  %v2622_v40 = vld [vmem:[%s2505_s21 + $0x78] sm:$0xff]  ;;  %v236_v50 = vld [vmem:[%s2499_s18 + $0x90] sm:$0xff] }
  0x23   : > { %v2580_v4 = vsel %vm389_vm7, %v325_v63, -1000.0  ;;  %v296_v6 = vmul.f32 0.01, %v232_v0  ;;  %v2583_v7 = vsel %vm388_vm8, %v324_v1, -1000.0  ;;  %v2585_v8 = vsel %vm387_vm9, %v323_v2, -1000.0  ;;  %v238_v44 = vld [vmem:[%s2499_s18 + $0xa0] sm:$0xff] }
  0x24   : > { %vm264_vm10 = vcmp.gt.f32.partialorder %v232_v0, 0.0  ;;  %v295_v10 = vmul.f32 0.01, %v231_v3  ;;  %v476_v11 = vsel %vm442_vm0, %v2580_v4, -inf  ;;  %v294_v12 = vmul.f32 0.01, %v230_v5 }
  0x25   : > { %vm263_vm11 = vcmp.gt.f32.partialorder %v231_v3, 0.0  ;;  %v473_v15 = vsel %vm442_vm0, %v2583_v7, -inf  ;;  %vm262_vm12 = vcmp.gt.f32.partialorder %v230_v5, 0.0  ;;  %v470_v17 = vsel %vm442_vm0, %v2585_v8, -inf  ;;  %v237_v47 = vld [vmem:[%s2499_s18 + $0x98] sm:$0xff]  ;;  %v2639_v56 = vld [vmem:[%s2505_s21 + $0xa0] sm:$0xff] }
  0x26   : > { %v328_v19 = vsel %vm264_vm10, %v232_v0, %v296_v6  ;;  %vm392_vm13 = vcmp.gt.f32.partialorder %v360_v9, 0.0  ;;  %v327_v22 = vsel %vm263_vm11, %v231_v3, %v295_v10  ;;  %vm391_vm14 = vcmp.gt.f32.partialorder %v2591_v14, 0.0  ;;  %v2649_v63 = vld [vmem:[%s2505_s21 + $0x90] sm:$0xff]  ;;  %v241_v2 = vld [vmem:[%s2499_s18 + $0xb8] sm:$0xff]  ;;  %v239_v10 = vld [vmem:[%s2499_s18 + $0xa8] sm:$0xff] }
  0x27   : > { %468 = vmax.xlane.f32.xlu2 %v467_v57  ;;  %v326_v24 = vsel %vm262_vm12, %v230_v5, %v294_v12  ;;  %vm390_vm15 = vcmp.gt.f32.partialorder %v2596_v16, 0.0  ;;  %v2604_v26 = vsel %vm392_vm13, %v328_v19, -1000.0  ;;  %v299_v29 = vmul.f32 0.01, %v235_v20  ;;  %v240_v6 = vld [vmem:[%s2499_s18 + $0xb0] sm:$0xff] }
  0x28   : > { %465 = vmax.xlane.f32.xlu1 %v464_v60  ;;  %v2607_v30 = vsel %vm391_vm14, %v327_v22, -1000.0  ;;  %v2609_v31 = vsel %vm390_vm15, %v326_v24, -1000.0  ;;  %vm267_vm1 = vcmp.gt.f32.partialorder %v235_v20, 0.0  ;;  %v298_v34 = vmul.f32 0.01, %v234_v25  ;;  %v2644_v60 = vld [vmem:[%s2505_s21 + $0x98] sm:$0xff] }
  0x29   : > { %462 = vmax.xlane.f32.xlu0 %v461_v62  ;;  %v485_v35 = vsel %vm442_vm0, %v2604_v26, -inf  ;;  %v297_v36 = vmul.f32 0.01, %v233_v27  ;;  %vm266_vm2 = vcmp.gt.f32.partialorder %v234_v25, 0.0  ;;  %v482_v39 = vsel %vm442_vm0, %v2607_v30, -inf  ;;  %v2671_v24 = vld [vmem:[%s2505_s21 + $0xb0] sm:$0xff] }
  0x2a   : > { %vm265_vm3 = vcmp.gt.f32.partialorder %v233_v27, 0.0  ;;  %v479_v41 = vsel %vm442_vm0, %v2609_v31, -inf  ;;  %v331_v43 = vsel %vm267_vm1, %v235_v20, %v299_v29  ;;  %vm395_vm4 = vcmp.gt.f32.partialorder %v2612_v32, 0.0 }
  0x2b   : > { %v330_v45 = vsel %vm266_vm2, %v234_v25, %v298_v34  ;;  %vm394_vm5 = vcmp.gt.f32.partialorder %v2617_v38, 0.0  ;;  %v329_v46 = vsel %vm265_vm3, %v233_v27, %v297_v36  ;;  %vm393_vm6 = vcmp.gt.f32.partialorder %v2622_v40, 0.0  ;;  %v2676_v27 = vld [vmem:[%s2505_s21 + $0xa8] sm:$0xff] }
  0x2c   : > { %v2631_v49 = vsel %vm395_vm4, %v331_v43, -1000.0  ;;  %v302_v51 = vmul.f32 0.01, %v238_v44  ;;  %v2634_v52 = vsel %vm394_vm5, %v330_v45, -1000.0  ;;  %v2636_v55 = vsel %vm393_vm6, %v329_v46, -1000.0 }
  0x2d   : > { %vm270_vm7 = vcmp.gt.f32.partialorder %v238_v44, 0.0  ;;  %v301_v57 = vmul.f32 0.01, %v237_v47  ;;  %v494_v58 = vsel %vm442_vm0, %v2631_v49, -inf  ;;  %v300_v59 = vmul.f32 0.01, %v236_v50 }
  0x2e   : > { %vm269_vm8 = vcmp.gt.f32.partialorder %v237_v47, 0.0  ;;  %v491_v62 = vsel %vm442_vm0, %v2634_v52, -inf  ;;  %vm268_vm9 = vcmp.gt.f32.partialorder %v236_v50, 0.0  ;;  %v488_v0 = vsel %vm442_vm0, %v2636_v55, -inf }
  0x2f   : > { %477 = vmax.xlane.f32.xlu2 %v476_v11  ;;  %v334_v1 = vsel %vm270_vm7, %v238_v44, %v302_v51  ;;  %vm398_vm10 = vcmp.gt.f32.partialorder %v2639_v56, 0.0  ;;  %v333_v3 = vsel %vm269_vm8, %v237_v47, %v301_v57  ;;  %vm397_vm11 = vcmp.gt.f32.partialorder %v2644_v60, 0.0  ;;  %v242_v44 = vld [vmem:[%s2499_s18 + $0xc0] sm:$0xff] }
  0x30   : > { %474 = vmax.xlane.f32.xlu1 %v473_v15  ;;  %v332_v5 = vsel %vm268_vm9, %v236_v50, %v300_v59  ;;  %vm396_vm12 = vcmp.gt.f32.partialorder %v2649_v63, 0.0  ;;  %v2658_v9 = vsel %vm398_vm10, %v334_v1, -1000.0  ;;  %v305_v11 = vmul.f32 0.01, %v241_v2  ;;  %v2693_v50 = vld [vmem:[%s2505_s21 + $0xd0] sm:$0xff]  ;;  %v2698_v59 = vld [vmem:[%s2505_s21 + $0xc8] sm:$0xff] }
  0x31   : > { %471 = vmax.xlane.f32.xlu0 %v470_v17  ;;  %v2661_v12 = vsel %vm397_vm11, %v333_v3, -1000.0  ;;  %v2663_v15 = vsel %vm396_vm12, %v332_v5, -1000.0  ;;  %vm273_vm13 = vcmp.gt.f32.partialorder %v241_v2, 0.0  ;;  %v2666_v17 = vld [vmem:[%s2505_s21 + $0xb8] sm:$0xff]  ;;  %v304_v19 = vmul.f32 0.01, %v240_v6 }
  0x32   : > { %v503_v20 = vsel %vm442_vm0, %v2658_v9, -inf  ;;  %v303_v22 = vmul.f32 0.01, %v239_v10  ;;  %vm272_vm14 = vcmp.gt.f32.partialorder %v240_v6, 0.0  ;;  %v500_v25 = vsel %vm442_vm0, %v2661_v12, -inf  ;;  %3915 = vst [vmem:[#allocation2_spill] sm:$0xff] %v2693_v50 }
  0x33   : > { %vm271_vm15 = vcmp.gt.f32.partialorder %v239_v10, 0.0  ;;  %v497_v29 = vsel %vm442_vm0, %v2663_v15, -inf  ;;  %v337_v34 = vsel %vm273_vm13, %v241_v2, %v305_v11  ;;  %vm401_vm1 = vcmp.gt.f32.partialorder %v2666_v17, 0.0  ;;  %3916 = vst [vmem:[#allocation3_spill] sm:$0xff] %v2698_v59  ;;  %v247_v3 = vld [vmem:[%s2499_s18 + $0xe8] sm:$0xff] }
  0x34   : > { %v336_v36 = vsel %vm272_vm14, %v240_v6, %v304_v19  ;;  %vm400_vm2 = vcmp.gt.f32.partialorder %v2671_v24, 0.0  ;;  %vm399_vm3 = vcmp.gt.f32.partialorder %v2676_v27, 0.0  ;;  %v2685_v43 = vsel %vm401_vm1, %v337_v34, -1000.0  ;;  %v245_v19 = vld [vmem:[%s2499_s18 + $0xd8] sm:$0xff] }
  0x35   : > { %v2688_v46 = vsel %vm400_vm2, %v336_v36, -1000.0  ;;  %v512_v57 = vsel %vm442_vm0, %v2685_v43, -inf  ;;  %vm274_vm6 = vcmp.gt.f32.partialorder %v242_v44, 0.0  ;;  %vm404_vm7 = vcmp.gt.f32.partialorder %v2693_v50, 0.0 }
  0x36   : > { %vm403_vm8 = vcmp.gt.f32.partialorder %v2698_v59, 0.0  ;;  %vm279_vm10 = vcmp.gt.f32.partialorder %v247_v3, 0.0  ;;  %v309_v36 = vmul.f32 0.01, %v245_v19  ;;  %vm277_vm12 = vcmp.gt.f32.partialorder %v245_v19, 0.0 }
  0x37   : > { %486 = vmax.xlane.f32.xlu2 %v485_v35  ;;  %v244_v35 = vld [vmem:[%s2499_s18 + $0xd0] sm:$0xff] }
  0x38   : > { %483 = vmax.xlane.f32.xlu1 %v482_v39  ;;  %v335_v39 = vsel %vm271_vm15, %v239_v10, %v303_v22  ;;  %v308_v45 = vmul.f32 0.01, %v244_v35  ;;  %vm276_vm4 = vcmp.gt.f32.partialorder %v244_v35, 0.0  ;;  %v246_v10 = vld [vmem:[%s2499_s18 + $0xe0] sm:$0xff] }
  0x39   : > { %480 = vmax.xlane.f32.xlu0 %v479_v41  ;;  %v243_v41 = vld [vmem:[%s2499_s18 + $0xc8] sm:$0xff]  ;;  %v2690_v47 = vsel %vm399_vm3, %v335_v39, -1000.0  ;;  %v310_v34 = vmul.f32 0.01, %v246_v10  ;;  %vm278_vm11 = vcmp.gt.f32.partialorder %v246_v10, 0.0  ;;  %v2725_v39 = vld [vmem:[%s2505_s21 + $0xe0] sm:$0xff] }
  0x3a   : > { %v307_v51 = vmul.f32 0.01, %v243_v41  ;;  %vm275_vm5 = vcmp.gt.f32.partialorder %v243_v41, 0.0  ;;  %v506_v1 = vsel %vm442_vm0, %v2690_v47, -inf  ;;  %v340_v2 = vsel %vm276_vm4, %v244_v35, %v308_v45  ;;  %3918 = vst [vmem:[#allocation5_spill] sm:$0xff] %v2725_v39 }
  0x3b   : > { %v2712_v11 = vsel %vm404_vm7, %v340_v2, -1000.0  ;;  %vm406_vm14 = vcmp.gt.f32.partialorder %v2725_v39, 0.0  ;;  %v248_v2 = vld [vmem:[%s2499_s18 + $0xf0] sm:$0xff] }
  0x3c   : > { %v339_v5 = vsel %vm275_vm5, %v243_v41, %v307_v51  ;;  %v521_v35 = vsel %vm442_vm0, %v2712_v11, -inf  ;;  %vm280_vm2 = vcmp.gt.f32.partialorder %v248_v2, 0.0 }
  0x3d   : > { %v2715_v22 = vsel %vm403_vm8, %v339_v5, -1000.0 }
  0x3e   : > { %v518_v41 = vsel %vm442_vm0, %v2715_v22, -inf }
  0x3f   : > { %495 = vmax.xlane.f32.xlu2 %v494_v58  ;;  %v306_v58 = vmul.f32 0.01, %v242_v44 }
  0x40   : > { %492 = vmax.xlane.f32.xlu1 %v491_v62  ;;  %v509_v62 = vsel %vm442_vm0, %v2688_v46, -inf }
  0x41   : > { %489 = vmax.xlane.f32.xlu0 %v488_v0  ;;  %v2703_v0 = vld [vmem:[%s2505_s21 + $0xc0] sm:$0xff]  ;;  %v338_v6 = vsel %vm274_vm6, %v242_v44, %v306_v58  ;;  %v2730_v44 = vld [vmem:[%s2505_s21 + $0xd8] sm:$0xff]  ;;  %v341_v58 = vsel %vm277_vm12, %v245_v19, %v309_v36 }
  0x42   : > { %vm402_vm9 = vcmp.gt.f32.partialorder %v2703_v0, 0.0  ;;  %vm405_vm15 = vcmp.gt.f32.partialorder %v2730_v44, 0.0 }
  0x47   : > { %504 = vmax.xlane.f32.xlu2 %v503_v20  ;;  %v311_v20 = vmul.f32 0.01, %v247_v3 }
  0x48   : > { %501 = vmax.xlane.f32.xlu1 %v500_v25  ;;  %v2717_v25 = vsel %vm402_vm9, %v338_v6, -1000.0 }
  0x49   : > { %498 = vmax.xlane.f32.xlu0 %v497_v29  ;;  %v2720_v29 = vld [vmem:[%s2505_s21 + $0xe8] sm:$0xff]  ;;  %v515_v45 = vsel %vm442_vm0, %v2717_v25, -inf  ;;  %v343_v51 = vsel %vm279_vm10, %v247_v3, %v311_v20  ;;  %v2743_v3 = vsel %vm405_vm15, %v341_v58, -1000.0  ;;  %v312_v20 = vmul.f32 0.01, %v248_v2 }
  0x4a   : > { %3917 = vst [vmem:[#allocation4_spill] sm:$0xff] %v2720_v29  ;;  %vm407_vm13 = vcmp.gt.f32.partialorder %v2720_v29, 0.0  ;;  %v524_v36 = vsel %vm442_vm0, %v2743_v3, -inf }
  0x4f   : > { %513 = vmax.xlane.f32.xlu2 %v512_v57  ;;  %v342_v57 = vsel %vm278_vm11, %v246_v10, %v310_v34  ;;  %v2748_v34 = vld [vmem:[%s2505_s21 + $0xf8] sm:$0xff] }
  0x50   : > { %510 = vmax.xlane.f32.xlu1 %v509_v62  ;;  %v249_v62 = vld [vmem:[%s2499_s18 + $0xf8] sm:$0xff]  ;;  %v2741_v5 = vsel %vm406_vm14, %v342_v57, -1000.0  ;;  %3919 = vst [vmem:[#allocation6_spill] sm:$0xff] %v2748_v34  ;;  %vm409_vm3 = vcmp.gt.f32.partialorder %v2748_v34, 0.0 }
  0x51   : > { %507 = vmax.xlane.f32.xlu0 %v506_v1  ;;  %v2738_v1 = vsel %vm407_vm13, %v343_v51, -1000.0  ;;  %v313_v6 = vmul.f32 0.01, %v249_v62  ;;  %vm281_vm1 = vcmp.gt.f32.partialorder %v249_v62, 0.0  ;;  %v527_v19 = vsel %vm442_vm0, %v2741_v5, -inf }
  0x52   : > { %v530_v10 = vsel %vm442_vm0, %v2738_v1, -inf }
  0x57   : > { %522 = vmax.xlane.f32.xlu2 %v521_v35  ;;  %v2753_v35 = vld [vmem:[%s2505_s21 + $0xf0] sm:$0xff] }
  0x58   : > { %519 = vmax.xlane.f32.xlu1 %v518_v41  ;;  %v345_v41 = vsel %vm281_vm1, %v249_v62, %v313_v6  ;;  %vm408_vm4 = vcmp.gt.f32.partialorder %v2753_v35, 0.0 }
  0x59   : > { %516 = vmax.xlane.f32.xlu0 %v515_v45  ;;  %v344_v45 = vsel %vm280_vm2, %v248_v2, %v312_v20  ;;  %v2759_v51 = vsel %vm409_vm3, %v345_v41, -1000.0 }
  0x5a   : > { %v2761_v57 = vsel %vm408_vm4, %v344_v45, -1000.0  ;;  %v536_v58 = vsel %vm442_vm0, %v2759_v51, -inf }
  0x5b   : > { %v533_v39 = vsel %vm442_vm0, %v2761_v57, -inf }
  0x5f   : > { %531 = vmax.xlane.f32.xlu2 %v530_v10 }
  0x60   : > { %528 = vmax.xlane.f32.xlu1 %v527_v19 }
  0x61   : > { %525 = vmax.xlane.f32.xlu0 %v524_v36 }
  0x68   : > { %537 = vmax.xlane.f32.xlu1 %v536_v58 }
  0x69   : > { %534 = vmax.xlane.f32.xlu0 %v533_v39 }
  0x8a   : > { %v457_v62 = vpop.xlane.xlu2 %456 }
  0x8b   : > { %v451_v6 = vpop.xlane.xlu1 %450  ;;  %v543_v39 = vsub.f32 %v2516_v13, %v457_v62 }
  0x8c   : > { %v541_v10 = vsub.f32 %v2522_v18, %v451_v6  ;;  %v445_v2 = vpop.xlane.xlu0 %444 }
  0x8d   : > { %v539_v20 = vsub.f32 %v2531_v23, %v445_v2 }
  0x8e   : > { %v575_v19 = vmul.f32 1.442695, %v541_v10 }
  0x8f   : > { %v571_v36 = vmul.f32 1.442695, %v539_v20 }
  0x90   : > { %2309 = vpow2.f32 %v575_v19 }
  0x91   : > { %2311 = vpow2.f32 %v571_v36 }
  0x92   : > { %v460_v41 = vpop.xlane.xlu2 %459 }
  0x93   : > { %v544_v45 = vsub.f32 %v2536_v28, %v460_v41  ;;  %v454_v34 = vpop.xlane.xlu1 %453 }
  0x94   : > { %v542_v29 = vsub.f32 %v2540_v33, %v454_v34  ;;  %v448_v59 = vpop.xlane.xlu0 %447  ;;  %v579_v33 = vmul.f32 1.442695, %v543_v39 }
  0x95   : > { %v581_v58 = vmul.f32 1.442695, %v544_v45  ;;  %v540_v50 = vsub.f32 %v2545_v37, %v448_v59 }
  0x96   : > { %v2773_v18 = vpop.eup %2309  ;;  %v577_v6 = vmul.f32 1.442695, %v542_v29 }
  0x97   : > { %v2775_v23 = vpop.eup %2311  ;;  %2313 = vpow2.f32 %v581_v58  ;;  %v573_v10 = vmul.f32 1.442695, %v540_v50  ;;  %v641_v2 = vsel %vm442_vm0, %v2773_v18, 0.0 }
  0x98   : > { %2315 = vpow2.f32 %v577_v6  ;;  %642 = vadd.xlane.f32.xlu1 %v641_v2  ;;  %v635_v28 = vsel %vm442_vm0, %v2775_v23, 0.0 }
  0x99   : > { %2317 = vpow2.f32 %v573_v10  ;;  %636 = vadd.xlane.f32.xlu2 %v635_v28 }
  0x9a   : > { %v469_v13 = vpop.xlane.xlu2 %468  ;;  %2319 = vpow2.f32 %v579_v33 }
  0x9b   : > { %v547_v37 = vsub.f32 %v2558_v48, %v469_v13  ;;  %v466_v59 = vpop.xlane.xlu1 %465 }
  0x9c   : > { %v463_v29 = vpop.xlane.xlu0 %462  ;;  %v546_v20 = vsub.f32 %v2562_v53, %v466_v59 }
  0x9d   : > { %v2782_v34 = vpop.eup %2313  ;;  %v587_v50 = vmul.f32 1.442695, %v547_v37  ;;  %v545_v62 = vsub.f32 %v2564_v54, %v463_v29 }
  0x9e   : > { %v2786_v19 = vpop.eup %2315  ;;  %v650_v36 = vsel %vm442_vm0, %v2782_v34, 0.0  ;;  %v585_v53 = vmul.f32 1.442695, %v546_v20 }
  0x9f   : > { %v2790_v41 = vpop.eup %2317  ;;  %2321 = vpow2.f32 %v587_v50  ;;  %v583_v45 = vmul.f32 1.442695, %v545_v62  ;;  %v644_v48 = vsel %vm442_vm0, %v2786_v19, 0.0 }
  0xa0   : > { %651 = vadd.xlane.f32.xlu1 %v650_v36  ;;  %v638_v39 = vsel %vm442_vm0, %v2790_v41, 0.0  ;;  %v2796_v58 = vpop.eup %2319 }
  0xa1   : > { %2323 = vpow2.f32 %v583_v45  ;;  %645 = vadd.xlane.f32.xlu2 %v644_v48  ;;  %639 = vadd.xlane.f32.xlu0 %v638_v39  ;;  %v647_v29 = vsel %vm442_vm0, %v2796_v58, 0.0 }
  0xa2   : > { %v478_v54 = vpop.xlane.xlu2 %477  ;;  %2325 = vpow2.f32 %v585_v53 }
  0xa3   : > { %v550_v6 = vsub.f32 %v2580_v4, %v478_v54  ;;  %v475_v10 = vpop.xlane.xlu1 %474 }
  0xa4   : > { %v472_v2 = vpop.xlane.xlu0 %471  ;;  %v549_v37 = vsub.f32 %v2583_v7, %v475_v10 }
  0xa5   : > { %v2799_v28 = vpop.eup %2321  ;;  %v593_v33 = vmul.f32 1.442695, %v550_v6  ;;  %v548_v13 = vsub.f32 %v2585_v8, %v472_v2 }
  0xa6   : > { %v659_v59 = vsel %vm442_vm0, %v2799_v28, 0.0  ;;  %v591_v8 = vmul.f32 1.442695, %v549_v37 }
  0xa7   : > { %v2807_v50 = vpop.eup %2323  ;;  %2327 = vpow2.f32 %v593_v33  ;;  %v589_v4 = vmul.f32 1.442695, %v548_v13 }
  0xa8   : > { %660 = vadd.xlane.f32.xlu1 %v659_v59  ;;  %v653_v62 = vsel %vm442_vm0, %v2807_v50, 0.0  ;;  %v2811_v7 = vpop.eup %2325 }
  0xa9   : > { %2329 = vpow2.f32 %v589_v4  ;;  %648 = vadd.xlane.f32.xlu0 %v647_v29  ;;  %654 = vadd.xlane.f32.xlu2 %v653_v62  ;;  %v656_v2 = vsel %vm442_vm0, %v2811_v7, 0.0 }
  0xaa   : > { %v487_v20 = vpop.xlane.xlu2 %486  ;;  %2331 = vpow2.f32 %v591_v8 }
  0xab   : > { %v553_v36 = vsub.f32 %v2604_v26, %v487_v20  ;;  %v484_v45 = vpop.xlane.xlu1 %483 }
  0xac   : > { %v481_v48 = vpop.xlane.xlu0 %480  ;;  %v552_v6 = vsub.f32 %v2607_v30, %v484_v45 }
  0xad   : > { %v2814_v39 = vpop.eup %2327  ;;  %v599_v53 = vmul.f32 1.442695, %v553_v36  ;;  %v551_v54 = vsub.f32 %v2609_v31, %v481_v48 }
  0xae   : > { %v668_v10 = vsel %vm442_vm0, %v2814_v39, 0.0  ;;  %v597_v31 = vmul.f32 1.442695, %v552_v6 }
  0xaf   : > { %v2822_v33 = vpop.eup %2329  ;;  %2333 = vpow2.f32 %v599_v53  ;;  %v595_v26 = vmul.f32 1.442695, %v551_v54 }
  0xb0   : > { %669 = vadd.xlane.f32.xlu1 %v668_v10  ;;  %v662_v13 = vsel %vm442_vm0, %v2822_v33, 0.0  ;;  %v2826_v30 = vpop.eup %2331 }
  0xb1   : > { %2335 = vpow2.f32 %v595_v26  ;;  %657 = vadd.xlane.f32.xlu0 %v656_v2  ;;  %663 = vadd.xlane.f32.xlu2 %v662_v13  ;;  %v665_v48 = vsel %vm442_vm0, %v2826_v30, 0.0 }
  0xb2   : > { %v496_v37 = vpop.xlane.xlu2 %495  ;;  %2337 = vpow2.f32 %v597_v31 }
  0xb3   : > { %v556_v59 = vsub.f32 %v2631_v49, %v496_v37  ;;  %v493_v29 = vpop.xlane.xlu1 %492 }
  0xb4   : > { %v490_v4 = vpop.xlane.xlu0 %489  ;;  %v555_v36 = vsub.f32 %v2634_v52, %v493_v29 }
  0xb5   : > { %v2829_v62 = vpop.eup %2333  ;;  %v605_v8 = vmul.f32 1.442695, %v556_v59  ;;  %v554_v20 = vsub.f32 %v2636_v55, %v490_v4 }
  0xb6   : > { %v677_v45 = vsel %vm442_vm0, %v2829_v62, 0.0  ;;  %v603_v55 = vmul.f32 1.442695, %v555_v36 }
  0xb7   : > { %v2837_v53 = vpop.eup %2335  ;;  %2339 = vpow2.f32 %v605_v8  ;;  %v601_v49 = vmul.f32 1.442695, %v554_v20 }
  0xb8   : > { %678 = vadd.xlane.f32.xlu1 %v677_v45  ;;  %v671_v54 = vsel %vm442_vm0, %v2837_v53, 0.0  ;;  %v2841_v52 = vpop.eup %2337 }
  0xb9   : > { %2341 = vpow2.f32 %v601_v49  ;;  %666 = vadd.xlane.f32.xlu0 %v665_v48  ;;  %672 = vadd.xlane.f32.xlu2 %v671_v54  ;;  %v674_v4 = vsel %vm442_vm0, %v2841_v52, 0.0 }
  0xba   : > { %v505_v6 = vpop.xlane.xlu2 %504  ;;  %2343 = vpow2.f32 %v603_v55 }
  0xbb   : > { %v559_v10 = vsub.f32 %v2658_v9, %v505_v6  ;;  %v502_v2 = vpop.xlane.xlu1 %501 }
  0xbc   : > { %v499_v26 = vpop.xlane.xlu0 %498  ;;  %v558_v59 = vsub.f32 %v2661_v12, %v502_v2 }
  0xbd   : > { %v2844_v13 = vpop.eup %2339  ;;  %v611_v31 = vmul.f32 1.442695, %v559_v10  ;;  %v557_v37 = vsub.f32 %v2663_v15, %v499_v26 }
  0xbe   : > { %v686_v29 = vsel %vm442_vm0, %v2844_v13, 0.0  ;;  %v609_v15 = vmul.f32 1.442695, %v558_v59 }
  0xbf   : > { %v2852_v8 = vpop.eup %2341  ;;  %2345 = vpow2.f32 %v611_v31  ;;  %v607_v9 = vmul.f32 1.442695, %v557_v37 }
  0xc0   : > { %687 = vadd.xlane.f32.xlu1 %v686_v29  ;;  %v680_v20 = vsel %vm442_vm0, %v2852_v8, 0.0  ;;  %v2856_v12 = vpop.eup %2343 }
  0xc1   : > { %2347 = vpow2.f32 %v607_v9  ;;  %675 = vadd.xlane.f32.xlu0 %v674_v4  ;;  %681 = vadd.xlane.f32.xlu2 %v680_v20  ;;  %v683_v26 = vsel %vm442_vm0, %v2856_v12, 0.0 }
  0xc2   : > { %v514_v36 = vpop.xlane.xlu2 %513  ;;  %2349 = vpow2.f32 %v609_v15 }
  0xc3   : > { %v562_v45 = vsub.f32 %v2685_v43, %v514_v36  ;;  %v511_v48 = vpop.xlane.xlu1 %510 }
  0xc4   : > { %v508_v49 = vpop.xlane.xlu0 %507  ;;  %v561_v10 = vsub.f32 %v2688_v46, %v511_v48 }
  0xc5   : > { %v2859_v54 = vpop.eup %2345  ;;  %v617_v55 = vmul.f32 1.442695, %v562_v45  ;;  %v560_v6 = vsub.f32 %v2690_v47, %v508_v49 }
  0xc6   : > { %v695_v2 = vsel %vm442_vm0, %v2859_v54, 0.0  ;;  %v615_v47 = vmul.f32 1.442695, %v561_v10 }
  0xc7   : > { %v2867_v31 = vpop.eup %2347  ;;  %2351 = vpow2.f32 %v617_v55  ;;  %v613_v43 = vmul.f32 1.442695, %v560_v6 }
  0xc8   : > { %696 = vadd.xlane.f32.xlu1 %v695_v2  ;;  %v689_v37 = vsel %vm442_vm0, %v2867_v31, 0.0  ;;  %v2871_v46 = vpop.eup %2349 }
  0xc9   : > { %2353 = vpow2.f32 %v613_v43  ;;  %684 = vadd.xlane.f32.xlu0 %v683_v26  ;;  %690 = vadd.xlane.f32.xlu2 %v689_v37  ;;  %v692_v49 = vsel %vm442_vm0, %v2871_v46, 0.0 }
  0xca   : > { %v523_v59 = vpop.xlane.xlu2 %522  ;;  %2355 = vpow2.f32 %v615_v47 }
  0xcb   : > { %v565_v29 = vsub.f32 %v2712_v11, %v523_v59  ;;  %v520_v4 = vpop.xlane.xlu1 %519 }
  0xcc   : > { %v517_v9 = vpop.xlane.xlu0 %516  ;;  %v564_v45 = vsub.f32 %v2715_v22, %v520_v4 }
  0xcd   : > { %v2874_v20 = vpop.eup %2351  ;;  %v623_v15 = vmul.f32 1.442695, %v565_v29  ;;  %v563_v36 = vsub.f32 %v2717_v25, %v517_v9 }
  0xce   : > { %v704_v48 = vsel %vm442_vm0, %v2874_v20, 0.0  ;;  %v621_v25 = vmul.f32 1.442695, %v564_v45 }
  0xcf   : > { %v2882_v55 = vpop.eup %2353  ;;  %2357 = vpow2.f32 %v623_v15  ;;  %v619_v11 = vmul.f32 1.442695, %v563_v36 }
  0xd0   : > { %705 = vadd.xlane.f32.xlu1 %v704_v48  ;;  %v698_v6 = vsel %vm442_vm0, %v2882_v55, 0.0  ;;  %v2886_v22 = vpop.eup %2355 }
  0xd1   : > { %2359 = vpow2.f32 %v619_v11  ;;  %693 = vadd.xlane.f32.xlu0 %v692_v49  ;;  %699 = vadd.xlane.f32.xlu2 %v698_v6  ;;  %v701_v9 = vsel %vm442_vm0, %v2886_v22, 0.0 }
  0xd2   : > { %v532_v10 = vpop.xlane.xlu2 %531  ;;  %2361 = vpow2.f32 %v621_v25 }
  0xd3   : > { %v568_v2 = vsub.f32 %v2738_v1, %v532_v10  ;;  %v529_v26 = vpop.xlane.xlu1 %528 }
  0xd4   : > { %v526_v43 = vpop.xlane.xlu0 %525  ;;  %v567_v29 = vsub.f32 %v2741_v5, %v529_v26 }
  0xd5   : > { %v2889_v37 = vpop.eup %2357  ;;  %v629_v47 = vmul.f32 1.442695, %v568_v2  ;;  %v566_v59 = vsub.f32 %v2743_v3, %v526_v43 }
  0xd6   : > { %v713_v4 = vsel %vm442_vm0, %v2889_v37, 0.0  ;;  %v627_v3 = vmul.f32 1.442695, %v567_v29 }
  0xd7   : > { %v2897_v15 = vpop.eup %2359  ;;  %2363 = vpow2.f32 %v629_v47  ;;  %v625_v1 = vmul.f32 1.442695, %v566_v59 }
  0xd8   : > { %714 = vadd.xlane.f32.xlu1 %v713_v4  ;;  %v707_v36 = vsel %vm442_vm0, %v2897_v15, 0.0  ;;  %v2901_v45 = vpop.eup %2361 }
  0xd9   : > { %2365 = vpow2.f32 %v625_v1  ;;  %702 = vadd.xlane.f32.xlu0 %v701_v9  ;;  %708 = vadd.xlane.f32.xlu2 %v707_v36  ;;  %v710_v10 = vsel %vm442_vm0, %v2901_v45, 0.0  ;;  %v2455_v1 = vmov 0  }
  0xda   : > { %2367 = vpow2.f32 %v627_v3  ;;  %2299 = vset.pattern.permute.xlu0 %v2455_v1  ;;  %2297 = vset.pattern.permute.xlu1 %v2455_v1 }
  0xdb   : > { %v538_v5 = vpop.xlane.xlu1 %537  ;;  %2298 = vset.pattern.permute.xlu2 %v2455_v1 }
  0xdc   : > { %v535_v48 = vpop.xlane.xlu0 %534  ;;  %v570_v6 = vsub.f32 %v2759_v51, %v538_v5 }
  0xdd   : > { %v2903_v49 = vpop.eup %2363  ;;  %v569_v11 = vsub.f32 %v2761_v57, %v535_v48 }
  0xde   : > { %v722_v25 = vsel %vm442_vm0, %v2903_v49, 0.0  ;;  %v633_v47 = vmul.f32 1.442695, %v570_v6 }
  0xdf   : > { %v2911_v2 = vpop.eup %2365  ;;  %v631_v26 = vmul.f32 1.442695, %v569_v11 }
  0xe0   : > { %723 = vadd.xlane.f32.xlu1 %v722_v25  ;;  %v716_v43 = vsel %vm442_vm0, %v2911_v2, 0.0  ;;  %v2915_v57 = vpop.eup %2367 }
  0xe1   : > { %2369 = vpow2.f32 %v631_v26  ;;  %711 = vadd.xlane.f32.xlu0 %v710_v10  ;;  %717 = vadd.xlane.f32.xlu2 %v716_v43  ;;  %v719_v51 = vsel %vm442_vm0, %v2915_v57, 0.0  ;;  %v2437_v43 = vld [vmem:[%s2505_s21 + $0x10] sm:$0xff] }
  0xe2   : > { %2371 = vpow2.f32 %v633_v47 }
  0xe7   : > { %v2919_v59 = vpop.eup %2369 }
  0xe8   : > { %v725_v29 = vsel %vm442_vm0, %v2919_v59, 0.0  ;;  %v2923_v4 = vpop.eup %2371 }
  0xe9   : > { %720 = vadd.xlane.f32.xlu0 %v719_v51  ;;  %726 = vadd.xlane.f32.xlu2 %v725_v29  ;;  %v728_v9 = vsel %vm442_vm0, %v2923_v4, 0.0  ;;  %v2438_v51 = vld [vmem:[%s2505_s21] sm:$0xff]  ;;  %vm2075_vm0 = vcmask 261120  }
  0xf1   : > { %729 = vadd.xlane.f32.xlu0 %v728_v9 }
 0x10b   : > { %v643_v36 = vpop.xlane.xlu1 %642 }
 0x10c   : > { %2373 = vrcp.f32 %v643_v36  ;;  %v637_v3 = vpop.xlane.xlu2 %636 }
 0x10d   : > { %2375 = vrcp.f32 %v637_v3 }
 0x112   : > { %v2374_v5 = vpop.eup %2373 }
 0x113   : > { %v2376_v48 = vpop.eup %2375  ;;  %v765_v11 = vmul.f32 %v2374_v5, %v2773_v18  ;;  %v652_v6 = vpop.xlane.xlu1 %651 }
 0x114   : > { %v763_v25 = vmul.f32 %v2376_v48, %v2775_v23  ;;  %v646_v10 = vpop.xlane.xlu2 %645  ;;  %v640_v26 = vpop.xlane.xlu0 %639 }
 0x115   : > { %v2930_v47 = vmul.f32 %v2437_v43, %v765_v11  ;;  %2377 = vrcp.f32 %v640_v26 }
 0x116   : > { %v2933_v29 = vmul.f32 %v2438_v51, %v763_v25  ;;  %2379 = vrcp.f32 %v646_v10  ;;  %v2439_v51 = vld [vmem:[%s2505_s21 + $0x18] sm:$0xff] }
 0x117   : > { %903 = vperm.xlu0 %2299, %v2930_v47  }
 0x118   : > { %893 = vperm.xlu1 %2297, %v2933_v29  }
 0x11b   : > { %v661_v9 = vpop.xlane.xlu1 %660  ;;  %v2378_v1 = vpop.eup %2377 }
 0x11c   : > { %v655_v18 = vpop.xlane.xlu2 %654  ;;  %v649_v36 = vpop.xlane.xlu0 %648  ;;  %v764_v23 = vmul.f32 %v2378_v1, %v2790_v41 }
 0x11d   : > { %2381 = vrcp.f32 %v649_v36  ;;  %v2380_v5 = vpop.eup %2379 }
 0x11e   : > { %v2939_v3 = vmul.f32 %v764_v23, %v2526_v21  ;;  %2383 = vrcp.f32 %v652_v6  ;;  %v766_v48 = vmul.f32 %v2380_v5, %v2786_v19  ;;  %v2440_v21 = vld [vmem:[%s2505_s21 + $0x20] sm:$0xff] }
 0x11f   : > { %2385 = vrcp.f32 %v655_v18 }
 0x120   : > { %898 = vperm.xlu2 %2298, %v2939_v3   ;;  %v2945_v1 = vmul.f32 %v2439_v51, %v766_v48 }
 0x123   : > { %v670_v11 = vpop.xlane.xlu1 %669  ;;  %v2382_v25 = vpop.eup %2381 }
 0x124   : > { %v664_v10 = vpop.xlane.xlu2 %663  ;;  %v658_v26 = vpop.xlane.xlu0 %657  ;;  %v767_v43 = vmul.f32 %v2382_v25, %v2796_v58 }
 0x125   : > { %2387 = vrcp.f32 %v664_v10  ;;  %v2384_v41 = vpop.eup %2383 }
 0x126   : > { %v2948_v36 = vmul.f32 %v2440_v21, %v767_v43  ;;  %v2386_v6 = vpop.eup %2385  ;;  %2389 = vrcp.f32 %v661_v9  ;;  %v768_v18 = vmul.f32 %v2384_v41, %v2782_v34  ;;  %v2441_v43 = vld [vmem:[%s2505_s21 + $0x28] sm:$0xff] }
 0x127   : > { %2391 = vrcp.f32 %v658_v26  ;;  %v769_v58 = vmul.f32 %v2386_v6, %v2807_v50 }
 0x128   : > { %908 = vperm.xlu2 %2298, %v2945_v1   ;;  %913 = vperm.xlu1 %2297, %v2948_v36   ;;  %v2959_v51 = vmul.f32 %v2441_v43, %v768_v18  ;;  %v2442_v18 = vld [vmem:[%s2505_s21 + $0x40] sm:$0xff] }
 0x129   : > { %v2962_v26 = vmul.f32 %v769_v58, %v2552_v42 }
 0x12b   : > { %v2388_v19 = vpop.eup %2387  ;;  %v679_v23 = vpop.xlane.xlu1 %678 }
 0x12c   : > { %v772_v5 = vmul.f32 %v2388_v19, %v2822_v33  ;;  %v673_v48 = vpop.xlane.xlu2 %672  ;;  %v667_v25 = vpop.xlane.xlu0 %666 }
 0x12d   : > { %2393 = vrcp.f32 %v673_v48  ;;  %v2390_v9 = vpop.eup %2389 }
 0x12e   : > { %v2956_v10 = vmul.f32 %v772_v5, %v2573_v61  ;;  %v2392_v21 = vpop.eup %2391  ;;  %2395 = vrcp.f32 %v670_v11  ;;  %v771_v34 = vmul.f32 %v2390_v9, %v2799_v28  ;;  %v2443_v5 = vld [vmem:[%s2505_s21 + $0x38] sm:$0xff] }
 0x12f   : > { %2397 = vrcp.f32 %v667_v25  ;;  %v770_v50 = vmul.f32 %v2392_v21, %v2811_v7 }
 0x130   : > { %938 = vperm.xlu0 %2299, %v2956_v10   ;;  %918 = vperm.xlu2 %2298, %v2959_v51   ;;  %v2974_v58 = vmul.f32 %v2442_v18, %v771_v34  ;;  %v2444_v34 = vld [vmem:[%s2505_s21 + $0x58] sm:$0xff] }
 0x131   : > { %923 = vperm.xlu1 %2297, %v2962_v26   ;;  %v2977_v48 = vmul.f32 %v2443_v5, %v770_v50 }
 0x133   : > { %v2394_v61 = vpop.eup %2393  ;;  %v688_v6 = vpop.xlane.xlu1 %687 }
 0x134   : > { %v775_v33 = vmul.f32 %v2394_v61, %v2837_v53  ;;  %v682_v42 = vpop.xlane.xlu2 %681  ;;  %v676_v41 = vpop.xlane.xlu0 %675 }
 0x135   : > { %2399 = vrcp.f32 %v682_v42  ;;  %v2396_v11 = vpop.eup %2395 }
 0x136   : > { %v2971_v19 = vmul.f32 %v775_v33, %v2596_v16  ;;  %v2398_v25 = vpop.eup %2397  ;;  %2401 = vrcp.f32 %v679_v23  ;;  %v774_v28 = vmul.f32 %v2396_v11, %v2814_v39  ;;  %v2445_v33 = vld [vmem:[%s2505_s21 + $0x50] sm:$0xff] }
 0x137   : > { %2403 = vrcp.f32 %v676_v41  ;;  %v773_v7 = vmul.f32 %v2398_v25, %v2826_v30 }
 0x138   : > { %953 = vperm.xlu0 %2299, %v2971_v19   ;;  %928 = vperm.xlu2 %2298, %v2977_v48   ;;  %v2989_v50 = vmul.f32 %v2444_v34, %v774_v28 }
 0x139   : > { %933 = vperm.xlu1 %2297, %v2974_v58   ;;  %v2992_v42 = vmul.f32 %v2445_v33, %v773_v7 }
 0x13b   : > { %v2400_v16 = vpop.eup %2399  ;;  %v697_v61 = vpop.xlane.xlu1 %696 }
 0x13c   : > { %v778_v53 = vmul.f32 %v2400_v16, %v2852_v8  ;;  %v691_v9 = vpop.xlane.xlu2 %690  ;;  %v685_v43 = vpop.xlane.xlu0 %684 }
 0x13d   : > { %2405 = vrcp.f32 %v691_v9  ;;  %v2402_v23 = vpop.eup %2401 }
 0x13e   : > { %v2986_v21 = vmul.f32 %v778_v53, %v2622_v40  ;;  %v2404_v39 = vpop.eup %2403  ;;  %2407 = vrcp.f32 %v688_v6  ;;  %v777_v30 = vmul.f32 %v2402_v23, %v2829_v62  ;;  %v2446_v6 = vld [vmem:[%s2505_s21 + $0x70] sm:$0xff] }
 0x13f   : > { %2409 = vrcp.f32 %v685_v43  ;;  %v776_v8 = vmul.f32 %v2404_v39, %v2841_v52 }
 0x140   : > { %968 = vperm.xlu0 %2299, %v2986_v21   ;;  %943 = vperm.xlu2 %2298, %v2992_v42   ;;  %v3004_v16 = vmul.f32 %v2446_v6, %v777_v30 }
 0x141   : > { %948 = vperm.xlu1 %2297, %v2989_v50   ;;  %v3007_v28 = vmul.f32 %v776_v8, %v2591_v14 }
 0x143   : > { %v2406_v40 = vpop.eup %2405  ;;  %v706_v62 = vpop.xlane.xlu1 %705 }
 0x144   : > { %v781_v41 = vmul.f32 %v2406_v40, %v2867_v31  ;;  %v700_v11 = vpop.xlane.xlu2 %699  ;;  %v694_v18 = vpop.xlane.xlu0 %693 }
 0x145   : > { %2411 = vrcp.f32 %v700_v11  ;;  %v2408_v25 = vpop.eup %2407 }
 0x146   : > { %v3001_v5 = vmul.f32 %v781_v41, %v2649_v63  ;;  %v2410_v7 = vpop.eup %2409  ;;  %2413 = vrcp.f32 %v697_v61  ;;  %v780_v63 = vmul.f32 %v2408_v25, %v2844_v13 }
 0x147   : > { %2415 = vrcp.f32 %v694_v18  ;;  %v779_v31 = vmul.f32 %v2410_v7, %v2856_v12 }
 0x148   : > { %983 = vperm.xlu0 %2299, %v3001_v5   ;;  %958 = vperm.xlu2 %2298, %v3007_v28   ;;  %v3019_v61 = vmul.f32 %v780_v63, %v2612_v32 }
 0x149   : > { %963 = vperm.xlu1 %2297, %v3004_v16   ;;  %v3022_v34 = vmul.f32 %v779_v31, %v2617_v38  ;;  %v3923_v31 = vld [vmem:[#allocation2_spill] sm:$0xff] }
 0x14b   : > { %v2412_v52 = vpop.eup %2411 }
 0x14c   : > { %v784_v53 = vmul.f32 %v2412_v52, %v2882_v55  ;;  %v709_v9 = vpop.xlane.xlu2 %708  ;;  %v703_v14 = vpop.xlane.xlu0 %702 }
 0x14d   : > { %2417 = vrcp.f32 %v709_v9  ;;  %v2414_v23 = vpop.eup %2413  ;;  %v715_v55 = vpop.xlane.xlu1 %714  ;;  %v3924_v9 = vld [vmem:[#allocation3_spill] sm:$0xff] }
 0x14e   : > { %v3016_v43 = vmul.f32 %v784_v53, %v2676_v27  ;;  %v2416_v33 = vpop.eup %2415  ;;  %2419 = vrcp.f32 %v706_v62  ;;  %v783_v27 = vmul.f32 %v2414_v23, %v2859_v54 }
 0x14f   : > { %2421 = vrcp.f32 %v703_v14  ;;  %v782_v12 = vmul.f32 %v2416_v33, %v2871_v46  ;;  %v3927_v33 = vld [vmem:[#allocation5_spill] sm:$0xff] }
 0x150   : > { %998 = vperm.xlu0 %2299, %v3016_v43   ;;  %973 = vperm.xlu2 %2298, %v3022_v34   ;;  %v3034_v8 = vmul.f32 %v783_v27, %v2639_v56 }
 0x151   : > { %978 = vperm.xlu1 %2297, %v3019_v61   ;;  %v3037_v41 = vmul.f32 %v782_v12, %v2644_v60  ;;  %v2456_v12 = vmov 1  }
 0x153   : > { %v2418_v13 = vpop.eup %2417 }
 0x154   : > { %v787_v32 = vmul.f32 %v2418_v13, %v2897_v15  ;;  %v718_v39 = vpop.xlane.xlu2 %717  ;;  %v712_v38 = vpop.xlane.xlu0 %711 }
 0x155   : > { %2423 = vrcp.f32 %v718_v39  ;;  %v2420_v30 = vpop.eup %2419  ;;  %v724_v18 = vpop.xlane.xlu1 %723 }
 0x156   : > { %v3031_v40 = vmul.f32 %v787_v32, %v2703_v0  ;;  %v2422_v11 = vpop.eup %2421  ;;  %2425 = vrcp.f32 %v715_v55  ;;  %v786_v0 = vmul.f32 %v2420_v30, %v2874_v20 }
 0x157   : > { %2427 = vrcp.f32 %v712_v38  ;;  %v785_v46 = vmul.f32 %v2422_v11, %v2886_v22 }
 0x158   : > { %3920 = vst [vmem:[#allocation7_spill] sm:$0xff] %v3031_v40  ;;  %1013 = vperm.xlu0 %2299, %v3031_v40   ;;  %988 = vperm.xlu2 %2298, %v3037_v41   ;;  %v3049_v7 = vmul.f32 %v786_v0, %v2666_v17 }
 0x159   : > { %993 = vperm.xlu1 %2297, %v3034_v8   ;;  %v3052_v62 = vmul.f32 %v785_v46, %v2671_v24 }
 0x15b   : > { %v2424_v54 = vpop.eup %2423 }
 0x15c   : > { %v790_v56 = vmul.f32 %v2424_v54, %v2911_v2  ;;  %v727_v15 = vpop.xlane.xlu2 %726  ;;  %v721_v60 = vpop.xlane.xlu0 %720 }
 0x15d   : > { %2429 = vrcp.f32 %v727_v15  ;;  %v2426_v6 = vpop.eup %2425 }
 0x15e   : > { %v3046_v25 = vmul.f32 %v790_v56, %v2730_v44  ;;  %v2428_v52 = vpop.eup %2427  ;;  %2431 = vrcp.f32 %v724_v18  ;;  %v789_v44 = vmul.f32 %v2426_v6, %v2889_v37 }
 0x15f   : > { %2433 = vrcp.f32 %v721_v60  ;;  %v788_v22 = vmul.f32 %v2428_v52, %v2901_v45  ;;  %v3926_v45 = vld [vmem:[#allocation4_spill] sm:$0xff] }
 0x160   : > { %3921 = vst [vmem:[#allocation8_spill] sm:$0xff] %v3046_v25  ;;  %1028 = vperm.xlu0 %2299, %v3046_v25   ;;  %1003 = vperm.xlu2 %2298, %v3052_v62   ;;  %v3064_v53 = vmul.f32 %v789_v44, %v3923_v31 }
 0x161   : > { %1008 = vperm.xlu1 %2297, %v3049_v7   ;;  %v3067_v14 = vmul.f32 %v788_v22, %v3924_v9 }
 0x163   : > { %v2430_v20 = vpop.eup %2429  ;;  %3925 = vst [vmem:[#allocation2_spill] sm:$0xff] %v3067_v14 }
 0x164   : > { %v793_v17 = vmul.f32 %v2430_v20, %v2919_v59  ;;  %v2432_v24 = vpop.eup %2431  ;;  %v730_v63 = vpop.xlane.xlu0 %729 }
 0x165   : > { %v2434_v23 = vpop.eup %2433  ;;  %2435 = vrcp.f32 %v730_v63  ;;  %v792_v37 = vmul.f32 %v2432_v24, %v2903_v49  ;;  %v3929_v49 = vld [vmem:[#allocation6_spill] sm:$0xff] }
 0x166   : > { %v3061_v2 = vmul.f32 %v793_v17, %v2753_v35  ;;  %v791_v35 = vmul.f32 %v2434_v23, %v2915_v57 }
 0x167   : > { %v3075_v59 = vmul.f32 %v792_v37, %v3926_v45 }
 0x168   : > { %3922 = vst [vmem:[#allocation9_spill] sm:$0xff] %v3061_v2  ;;  %1043 = vperm.xlu0 %2299, %v3061_v2   ;;  %1018 = vperm.xlu2 %2298, %v3067_v14   ;;  %v3078_v13 = vmul.f32 %v791_v35, %v3927_v33 }
 0x169   : > { %1023 = vperm.xlu1 %2297, %v3064_v53  }
 0x16a   : > { %3928 = vst [vmem:[#allocation3_spill] sm:$0xff] %v3078_v13 }
 0x16b   : > { %v2436_v27 = vpop.eup %2435 }
 0x16c   : > { %v794_v55 = vmul.f32 %v2436_v27, %v2923_v4 }
 0x16e   : > { %v3085_v32 = vmul.f32 %v794_v55, %v3929_v49  ;;  %v2267_v55 = vld [vmem:[%s3181_s25 + $0x8] sm:$0xff]  }
 0x170   : > { %2301 = vset.pattern.permute.xlu0 %v2456_v12  ;;  %1033 = vperm.xlu2 %2298, %v3078_v13   ;;  %3930 = vst [vmem:[#allocation4_spill] sm:$0xff] %v3085_v32 }
 0x171   : > { %1038 = vperm.xlu1 %2297, %v3075_v59   ;;  %1120 = vperm.xlu0 %2301, %v2939_v3  }
 0x178   : > { %1048 = vperm.xlu2 %2298, %v3085_v32  }
 0x179   : > { %2300 = vset.pattern.permute.xlu1 %v2456_v12  ;;  %1140 = vperm.xlu0 %2301, %v2962_v26  }
 0x17a   : > { %1116 = vperm.xlu1 %2300, %v2933_v29   ;;  %v3090_v57 = vpop.permute.xlu2 %898 }
 0x17b   : > { %3931 = vst [vmem:[#allocation5_spill] sm:$0xff] %v3090_v57 }
 0x180   : > { %2302 = vset.pattern.permute.xlu2 %v2456_v12 }
 0x181   : > { %1152 = vperm.xlu0 %2301, %v2956_v10   ;;  %1124 = vperm.xlu2 %2302, %v2930_v47  }
 0x182   : > { %1128 = vperm.xlu1 %2300, %v2945_v1   ;;  %v3095_v4 = vpop.permute.xlu2 %908 }
 0x183   : > { %3932 = vst [vmem:[#allocation6_spill] sm:$0xff] %v3095_v4  ;;  %v2268_v4 = vld [vmem:[%s3181_s25 + $0x10] sm:$0xff]  }
 0x189   : > { %1164 = vperm.xlu0 %2301, %v2971_v19   ;;  %1132 = vperm.xlu2 %2302, %v2948_v36   ;;  %v3109_v11 = vpop.permute.xlu0 %903 }
 0x18a   : > { %1136 = vperm.xlu1 %2300, %v2959_v51   ;;  %v3100_v39 = vpop.permute.xlu2 %918  ;;  %v3104_v38 = vpop.permute.xlu1 %893  ;;  %3936 = vst [vmem:[#allocation13_spill] sm:$0xff] %v3109_v11 }
 0x18b   : > { %3933 = vst [vmem:[#allocation10_spill] sm:$0xff] %v3100_v39 }
 0x18c   : > { %3934 = vst [vmem:[#allocation11_spill] sm:$0xff] %v3104_v38  ;;  %v3202_v38 = vunpack.c.l.bf16 %v2268_v4 }
 0x18e   : > { %3965 = vst [vmem:[#allocation42_spill] sm:$0xff] %v3202_v38 }
 0x191   : > { %1176 = vperm.xlu0 %2301, %v2986_v21   ;;  %1144 = vperm.xlu2 %2302, %v2977_v48  }
 0x192   : > { %1148 = vperm.xlu1 %2300, %v2974_v58   ;;  %v3107_v30 = vpop.permute.xlu2 %928 }
 0x193   : > { %3935 = vst [vmem:[#allocation12_spill] sm:$0xff] %v3107_v30 }
 0x199   : > { %1188 = vperm.xlu0 %2301, %v3001_v5   ;;  %1156 = vperm.xlu2 %2302, %v2992_v42  }
 0x19a   : > { %1160 = vperm.xlu1 %2300, %v2989_v50   ;;  %v3114_v54 = vpop.permute.xlu1 %913  ;;  %v3116_v0 = vpop.permute.xlu2 %943 }
 0x19b   : > { %3937 = vst [vmem:[#allocation14_spill] sm:$0xff] %v3114_v54 }
 0x19c   : > { %3938 = vst [vmem:[#allocation15_spill] sm:$0xff] %v3116_v0 }
 0x1a1   : > { %1200 = vperm.xlu0 %2301, %v3016_v43   ;;  %1168 = vperm.xlu2 %2302, %v3007_v28  }
 0x1a2   : > { %1172 = vperm.xlu1 %2300, %v3004_v16   ;;  %v3120_v46 = vpop.permute.xlu0 %938  ;;  %v3125_v15 = vpop.permute.xlu2 %958 }
 0x1a3   : > { %3939 = vst [vmem:[#allocation16_spill] sm:$0xff] %v3120_v46  ;;  %v3123_v56 = vpop.permute.xlu1 %923 }
 0x1a4   : > { %3940 = vst [vmem:[#allocation17_spill] sm:$0xff] %v3123_v56 }
 0x1a5   : > { %3941 = vst [vmem:[#allocation18_spill] sm:$0xff] %v3125_v15 }
 0x1a9   : > { %1212 = vperm.xlu0 %2301, %v3031_v40   ;;  %1180 = vperm.xlu2 %2302, %v3022_v34  }
 0x1aa   : > { %1184 = vperm.xlu1 %2300, %v3019_v61   ;;  %v3129_v60 = vpop.permute.xlu0 %953  ;;  %v3134_v6 = vpop.permute.xlu2 %973 }
 0x1ab   : > { %3942 = vst [vmem:[#allocation19_spill] sm:$0xff] %v3129_v60  ;;  %v3132_v18 = vpop.permute.xlu1 %933 }
 0x1ac   : > { %3943 = vst [vmem:[#allocation20_spill] sm:$0xff] %v3132_v18  ;;  %v2204_v18 = vld [vmem:[%s3181_s25] sm:$0xff]  }
 0x1ad   : > { %3944 = vst [vmem:[#allocation21_spill] sm:$0xff] %v3134_v6  ;;  %v3193_v46 = vunpack.c.h.bf16 %v2204_v18  ;;  %v3200_v54 = vunpack.c.l.bf16 %v2204_v18 }
 0x1af   : > { %3964 = vst [vmem:[#allocation41_spill] sm:$0xff] %v3200_v54 }
 0x1b1   : > { %1224 = vperm.xlu0 %2301, %v3046_v25   ;;  %1192 = vperm.xlu2 %2302, %v3037_v41  }
 0x1b2   : > { %1196 = vperm.xlu1 %2300, %v3034_v8   ;;  %v3138_v52 = vpop.permute.xlu0 %968  ;;  %v3143_v44 = vpop.permute.xlu2 %988 }
 0x1b3   : > { %3945 = vst [vmem:[#allocation22_spill] sm:$0xff] %v3138_v52  ;;  %v3141_v20 = vpop.permute.xlu1 %948 }
 0x1b4   : > { %3946 = vst [vmem:[#allocation23_spill] sm:$0xff] %v3141_v20 }
 0x1b5   : > { %3947 = vst [vmem:[#allocation24_spill] sm:$0xff] %v3143_v44 }
 0x1b9   : > { %1236 = vperm.xlu0 %2301, %v3061_v2   ;;  %1204 = vperm.xlu2 %2302, %v3052_v62  }
 0x1ba   : > { %1208 = vperm.xlu1 %2300, %v3049_v7   ;;  %v3147_v22 = vpop.permute.xlu0 %983  ;;  %v3152_v24 = vpop.permute.xlu2 %1003 }
 0x1bb   : > { %3948 = vst [vmem:[#allocation25_spill] sm:$0xff] %v3147_v22  ;;  %v3150_v17 = vpop.permute.xlu1 %963 }
 0x1bc   : > { %3949 = vst [vmem:[#allocation26_spill] sm:$0xff] %v3150_v17  ;;  %v3188_v17 = vunpack.c.l.bf16 %v2267_v55 }
 0x1bd   : > { %3950 = vst [vmem:[#allocation27_spill] sm:$0xff] %v3152_v24 }
 0x1be   : > { %3962 = vst [vmem:[#allocation39_spill] sm:$0xff] %v3188_v17 }
 0x1c1   : > { %1216 = vperm.xlu2 %2302, %v3067_v14  }
 0x1c2   : > { %1220 = vperm.xlu1 %2300, %v3064_v53   ;;  %v3155_v63 = vpop.permute.xlu0 %998  ;;  %v3160_v9 = vpop.permute.xlu2 %1018 }
 0x1c3   : > { %3951 = vst [vmem:[#allocation28_spill] sm:$0xff] %v3155_v63  ;;  %v3158_v31 = vpop.permute.xlu1 %978 }
 0x1c4   : > { %3952 = vst [vmem:[#allocation29_spill] sm:$0xff] %v3158_v31 }
 0x1c5   : > { %3953 = vst [vmem:[#allocation30_spill] sm:$0xff] %v3160_v9 }
 0x1c9   : > { %1228 = vperm.xlu2 %2302, %v3078_v13  }
 0x1ca   : > { %1232 = vperm.xlu1 %2300, %v3075_v59   ;;  %v3163_v23 = vpop.permute.xlu0 %1013  ;;  %v3168_v35 = vpop.permute.xlu2 %1033 }
 0x1cb   : > { %3954 = vst [vmem:[#allocation31_spill] sm:$0xff] %v3163_v23  ;;  %v3166_v37 = vpop.permute.xlu1 %993 }
 0x1cc   : > { %3955 = vst [vmem:[#allocation32_spill] sm:$0xff] %v3166_v37 }
 0x1cd   : > { %3956 = vst [vmem:[#allocation33_spill] sm:$0xff] %v3168_v35 }
 0x1d1   : > { %1240 = vperm.xlu2 %2302, %v3085_v32  }
 0x1d2   : > { %v3170_v45 = vpop.permute.xlu0 %1028  ;;  %v3175_v27 = vpop.permute.xlu2 %1048 }
 0x1d3   : > { %3957 = vst [vmem:[#allocation34_spill] sm:$0xff] %v3170_v45  ;;  %v3173_v33 = vpop.permute.xlu1 %1008 }
 0x1d4   : > { %3958 = vst [vmem:[#allocation35_spill] sm:$0xff] %v3173_v33 }
 0x1d5   : > { %3959 = vst [vmem:[#allocation36_spill] sm:$0xff] %v3175_v27 }
 0x1da   : > { %v3183_v12 = vpop.permute.xlu0 %1043 }
 0x1db   : > { %3960 = vst [vmem:[#allocation37_spill] sm:$0xff] %v3183_v12  ;;  %v3186_v49 = vpop.permute.xlu1 %1023  ;;  %v1125_v20 = vpop.permute.xlu2 %1124 }
 0x1dc   : > { %3961 = vst [vmem:[#allocation38_spill] sm:$0xff] %v3186_v49  ;;  %v1245_v60 = vmul.f32 %v3188_v17, %v1125_v20 }
 0x1de   : > { %1311 = vrot.lane.b32.xlu2 %v1245_v60, %s2457_s26 }
 0x1e3   : > { %v3195_v39 = vpop.permute.xlu1 %1038  ;;  %v1121_v56 = vpop.permute.xlu0 %1120 }
 0x1e4   : > { %3963 = vst [vmem:[#allocation40_spill] sm:$0xff] %v3195_v39  ;;  %v1133_v11 = vpop.permute.xlu2 %1132  ;;  %v1244_v30 = vmul.f32 %v3193_v46, %v1121_v56  ;;  %v2269_v56 = vld [vmem:[%s3181_s25 + $0x18] sm:$0xff]   ;;  %v3209_v39 = vunpack.c.h.bf16 %v2267_v55 }
 0x1e5   : > { %v1247_v60 = vmul.f32 %v3202_v38, %v1133_v11 }
 0x1e6   : > { %1309 = vrot.lane.b32.xlu0 %v1244_v30, %s2457_s26  ;;  %3966 = vst [vmem:[#allocation43_spill] sm:$0xff] %v3209_v39  ;;  %v3211_v30 = vunpack.c.h.bf16 %v2269_v56 }
 0x1e8   : > { %3967 = vst [vmem:[#allocation44_spill] sm:$0xff] %v3211_v30 }
 0x1eb   : > { %v1141_v57 = vpop.permute.xlu0 %1140 }
 0x1ec   : > { %v1117_v20 = vpop.permute.xlu1 %1116  ;;  %v1145_v35 = vpop.permute.xlu2 %1144 }
 0x1ed   : > { %v1243_v27 = vmul.f32 %v3200_v54, %v1117_v20  ;;  %v1250_v9 = vmul.f32 %v3211_v30, %v1145_v35  ;;  %v3218_v20 = vunpack.c.h.bf16 %v2268_v4  ;;  %v2272_v4 = vld [vmem:[%s3181_s25 + $0x30] sm:$0xff]  }
 0x1ee   : > { %1315 = vrot.lane.b32.xlu0 %v1247_v60, %s2457_s26  ;;  %v3222_v60 = vunpack.c.l.bf16 %v2269_v56 }
 0x1ef   : > { %1307 = vrot.lane.b32.xlu1 %v1243_v27, %s2457_s26  ;;  %v2271_v27 = vld [vmem:[%s3181_s25 + $0x28] sm:$0xff]   ;;  %3968 = vst [vmem:[#allocation45_spill] sm:$0xff] %v3218_v20 }
 0x1f0   : > { %v3220_v55 = vunpack.c.l.bf16 %v2271_v27  ;;  %3969 = vst [vmem:[#allocation46_spill] sm:$0xff] %v3222_v60  ;;  %v1249_v44 = vmul.f32 %v3222_v60, %v1141_v57  ;;  %v3247_v23 = vunpack.c.h.bf16 %v2271_v27  ;;  %v2273_v27 = vld [vmem:[%s3181_s25 + $0x38] sm:$0xff]  }
 0x1f2   : > { %3974 = vst [vmem:[#allocation51_spill] sm:$0xff] %v3247_v23 }
 0x1f3   : > { %v1153_v11 = vpop.permute.xlu0 %1152 }
 0x1f4   : > { %v1129_v18 = vpop.permute.xlu1 %1128  ;;  %v1157_v24 = vpop.permute.xlu2 %1156 }
 0x1f5   : > { %v1246_v49 = vmul.f32 %v3209_v39, %v1129_v18  ;;  %v1253_v35 = vmul.f32 %v3220_v55, %v1157_v24 }
 0x1f6   : > { %1321 = vrot.lane.b32.xlu0 %v1250_v9, %s2457_s26  ;;  %v2270_v9 = vld [vmem:[%s3181_s25 + $0x20] sm:$0xff]  }
 0x1f7   : > { %1313 = vrot.lane.b32.xlu1 %v1246_v49, %s2457_s26  ;;  %v3232_v49 = vunpack.c.h.bf16 %v2272_v4  ;;  %v3234_v56 = vunpack.c.l.bf16 %v2270_v9  ;;  %v3236_v24 = vunpack.c.h.bf16 %v2270_v9 }
 0x1f9   : > { %3970 = vst [vmem:[#allocation47_spill] sm:$0xff] %v3232_v49 }
 0x1fa   : > { %3971 = vst [vmem:[#allocation48_spill] sm:$0xff] %v3234_v56 }
 0x1fb   : > { %v1165_v45 = vpop.permute.xlu0 %1164  ;;  %3972 = vst [vmem:[#allocation49_spill] sm:$0xff] %v3236_v24 }
 0x1fc   : > { %v1137_v12 = vpop.permute.xlu1 %1136  ;;  %v1169_v33 = vpop.permute.xlu2 %1168 }
 0x1fd   : > { %v1248_v18 = vmul.f32 %v3218_v20, %v1137_v12  ;;  %v1256_v37 = vmul.f32 %v3232_v49, %v1169_v33  ;;  %v3249_v33 = vunpack.c.l.bf16 %v2272_v4  ;;  %v3261_v4 = vunpack.c.l.bf16 %v2273_v27 }
 0x1fe   : > { %1327 = vrot.lane.b32.xlu0 %v1253_v35, %s2457_s26 }
 0x1ff   : > { %1317 = vrot.lane.b32.xlu2 %v1248_v18, %s2457_s26  ;;  %1319 = vrot.lane.b32.xlu1 %v1249_v44, %s2457_s26  ;;  %v1252_v18 = vmul.f32 %v3236_v24, %v1153_v11  ;;  %v2274_v44 = vld [vmem:[%s3181_s25 + $0x40] sm:$0xff]   ;;  %3975 = vst [vmem:[#allocation52_spill] sm:$0xff] %v3249_v33 }
 0x200   : > { %v3245_v9 = vunpack.c.l.bf16 %v2274_v44  ;;  %3977 = vst [vmem:[#allocation54_spill] sm:$0xff] %v3261_v4 }
 0x202   : > { %3973 = vst [vmem:[#allocation50_spill] sm:$0xff] %v3245_v9 }
 0x203   : > { %v1177_v35 = vpop.permute.xlu0 %1176 }
 0x204   : > { %v1149_v12 = vpop.permute.xlu1 %1148  ;;  %v1181_v6 = vpop.permute.xlu2 %1180 }
 0x205   : > { %v1251_v57 = vmul.f32 %v3234_v56, %v1149_v12  ;;  %v1259_v31 = vmul.f32 %v3245_v9, %v1181_v6  ;;  %v3263_v6 = vunpack.c.h.bf16 %v2273_v27  ;;  %v3274_v27 = vunpack.c.h.bf16 %v2274_v44  ;;  %v2276_v44 = vld [vmem:[%s3181_s25 + $0x50] sm:$0xff]  }
 0x206   : > { %1333 = vrot.lane.b32.xlu0 %v1256_v37, %s2457_s26  ;;  %v2275_v37 = vld [vmem:[%s3181_s25 + $0x48] sm:$0xff]   ;;  %v2458_v9 = vmov 2  }
 0x207   : > { %1323 = vrot.lane.b32.xlu2 %v1251_v57, %s2457_s26  ;;  %1325 = vrot.lane.b32.xlu1 %v1252_v18, %s2457_s26  ;;  %v1255_v57 = vmul.f32 %v3249_v33, %v1165_v45  ;;  %v3259_v18 = vunpack.c.h.bf16 %v2275_v37  ;;  %3978 = vst [vmem:[#allocation55_spill] sm:$0xff] %v3263_v6  ;;  %v1258_v22 = vmul.f32 %v3263_v6, %v1177_v35  ;;  %v3276_v52 = vunpack.c.l.bf16 %v2275_v37 }
 0x208   : > { %2305 = vset.pattern.permute.xlu0 %v2458_v9  ;;  %2304 = vset.pattern.permute.xlu1 %v2458_v9 }
 0x209   : > { %3976 = vst [vmem:[#allocation53_spill] sm:$0xff] %v3259_v18  ;;  %2303 = vset.pattern.permute.xlu2 %v2458_v9  ;;  %v2280_v9 = vld [vmem:[%s3181_s25 + $0x70] sm:$0xff]  }
 0x20a   : > { %3980 = vst [vmem:[#allocation57_spill] sm:$0xff] %v3276_v52 }
 0x20b   : > { %v1189_v63 = vpop.permute.xlu0 %1188 }
 0x20c   : > { %v1161_v12 = vpop.permute.xlu1 %1160  ;;  %v1193_v15 = vpop.permute.xlu2 %1192 }
 0x20d   : > { %v1254_v11 = vmul.f32 %v3247_v23, %v1161_v12  ;;  %v1262_v0 = vmul.f32 %v3259_v18, %v1193_v15 }
 0x20e   : > { %1339 = vrot.lane.b32.xlu0 %v1259_v31, %s2457_s26  ;;  %v2277_v31 = vld [vmem:[%s3181_s25 + $0x58] sm:$0xff]  }
 0x20f   : > { %1329 = vrot.lane.b32.xlu2 %v1254_v11, %s2457_s26  ;;  %1331 = vrot.lane.b32.xlu1 %v1255_v57, %s2457_s26  ;;  %v3272_v57 = vunpack.c.l.bf16 %v2277_v31  ;;  %v3301_v6 = vunpack.c.h.bf16 %v2277_v31 }
 0x211   : > { %3979 = vst [vmem:[#allocation56_spill] sm:$0xff] %v3272_v57 }
 0x213   : > { %v1201_v18 = vpop.permute.xlu0 %1200 }
 0x214   : > { %v1173_v12 = vpop.permute.xlu1 %1172  ;;  %v1205_v11 = vpop.permute.xlu2 %1204 }
 0x215   : > { %v1257_v45 = vmul.f32 %v3261_v4, %v1173_v12  ;;  %v1265_v12 = vmul.f32 %v3272_v57, %v1205_v11  ;;  %v3288_v11 = vunpack.c.l.bf16 %v2276_v44 }
 0x216   : > { %1345 = vrot.lane.b32.xlu0 %v1262_v0, %s2457_s26 }
 0x217   : > { %1335 = vrot.lane.b32.xlu2 %v1257_v45, %s2457_s26  ;;  %1337 = vrot.lane.b32.xlu1 %v1258_v22, %s2457_s26  ;;  %v1261_v45 = vmul.f32 %v3276_v52, %v1189_v63  ;;  %v2278_v22 = vld [vmem:[%s3181_s25 + $0x60] sm:$0xff]   ;;  %3982 = vst [vmem:[#allocation59_spill] sm:$0xff] %v3288_v11 }
 0x218   : > { %v3286_v37 = vunpack.c.h.bf16 %v2278_v22 }
 0x21a   : > { %3981 = vst [vmem:[#allocation58_spill] sm:$0xff] %v3286_v37 }
 0x21c   : > { %v1185_v15 = vpop.permute.xlu1 %1184  ;;  %v1217_v0 = vpop.permute.xlu2 %1216 }
 0x21d   : > { %v1260_v35 = vmul.f32 %v3274_v27, %v1185_v15  ;;  %v3290_v15 = vunpack.c.h.bf16 %v2276_v44  ;;  %v1268_v57 = vmul.f32 %v3286_v37, %v1217_v0  ;;  %v3299_v44 = vunpack.c.l.bf16 %v2280_v9 }
 0x21e   : > { %1351 = vrot.lane.b32.xlu0 %v1265_v12, %s2457_s26  ;;  %v1213_v12 = vpop.permute.xlu0 %1212  ;;  %v3303_v0 = vunpack.c.l.bf16 %v2278_v22 }
 0x21f   : > { %1341 = vrot.lane.b32.xlu2 %v1260_v35, %s2457_s26  ;;  %1343 = vrot.lane.b32.xlu1 %v1261_v45, %s2457_s26  ;;  %3983 = vst [vmem:[#allocation60_spill] sm:$0xff] %v3290_v15  ;;  %v1264_v35 = vmul.f32 %v3290_v15, %v1201_v18 }
 0x220   : > { %3984 = vst [vmem:[#allocation61_spill] sm:$0xff] %v3299_v44 }
 0x221   : > { %3985 = vst [vmem:[#allocation62_spill] sm:$0xff] %v3303_v0 }
 0x224   : > { %v1197_v63 = vpop.permute.xlu1 %1196  ;;  %v1229_v45 = vpop.permute.xlu2 %1228 }
 0x225   : > { %v1263_v52 = vmul.f32 %v3288_v11, %v1197_v63  ;;  %v1271_v18 = vmul.f32 %v3299_v44, %v1229_v45 }
 0x226   : > { %1357 = vrot.lane.b32.xlu0 %v1268_v57, %s2457_s26  ;;  %v2281_v57 = vld [vmem:[%s3181_s25 + $0x78] sm:$0xff]   ;;  %v1225_v15 = vpop.permute.xlu0 %1224 }
 0x227   : > { %1347 = vrot.lane.b32.xlu2 %v1263_v52, %s2457_s26  ;;  %1349 = vrot.lane.b32.xlu1 %v1264_v35, %s2457_s26  ;;  %v1267_v52 = vmul.f32 %v3303_v0, %v1213_v12  ;;  %v2279_v35 = vld [vmem:[%s3181_s25 + $0x68] sm:$0xff]   ;;  %v3313_v11 = vunpack.c.h.bf16 %v2281_v57  ;;  %v3327_v44 = vunpack.c.l.bf16 %v2281_v57 }
 0x228   : > { %v3315_v22 = vunpack.c.l.bf16 %v2279_v35  ;;  %v3317_v49 = vunpack.c.h.bf16 %v2279_v35 }
 0x22c   : > { %v1209_v63 = vpop.permute.xlu1 %1208  ;;  %v1241_v31 = vpop.permute.xlu2 %1240 }
 0x22d   : > { %v1266_v37 = vmul.f32 %v3301_v6, %v1209_v63  ;;  %v1274_v63 = vmul.f32 %v3313_v11, %v1241_v31 }
 0x22e   : > { %1363 = vrot.lane.b32.xlu0 %v1271_v18, %s2457_s26  ;;  %v3325_v18 = vunpack.c.h.bf16 %v2280_v9 }
 0x22f   : > { %1353 = vrot.lane.b32.xlu2 %v1266_v37, %s2457_s26  ;;  %1355 = vrot.lane.b32.xlu1 %v1267_v52, %s2457_s26  ;;  %v1270_v37 = vmul.f32 %v3317_v49, %v1225_v15  ;;  %v1237_v52 = vpop.permute.xlu0 %1236 }
 0x230   : > { %v1273_v31 = vmul.f32 %v3327_v44, %v1237_v52 }
 0x234   : > { %v1221_v45 = vpop.permute.xlu1 %1220 }
 0x235   : > { %v1269_v12 = vmul.f32 %v3315_v22, %v1221_v45 }
 0x236   : > { %1369 = vrot.lane.b32.xlu0 %v1274_v63, %s2457_s26 }
 0x237   : > { %1359 = vrot.lane.b32.xlu2 %v1269_v12, %s2457_s26  ;;  %1361 = vrot.lane.b32.xlu1 %v1270_v37, %s2457_s26 }
 0x238   : > { %v3340_v15 = vpop.permute.xlu2 %1311 }
 0x239   : > { %3986 = vst [vmem:[#allocation63_spill] sm:$0xff] %v3340_v15 }
 0x23c   : > { %v1233_v35 = vpop.permute.xlu1 %1232 }
 0x23d   : > { %v1272_v0 = vmul.f32 %v3325_v18, %v1233_v35 }
 0x23e   : > { %1444 = vperm.xlu0 %2305, %v2930_v47  }
 0x23f   : > { %1365 = vrot.lane.b32.xlu2 %v1272_v0, %s2457_s26  ;;  %1367 = vrot.lane.b32.xlu1 %v1273_v31, %s2457_s26 }
 0x246   : > { %1464 = vperm.xlu0 %2305, %v2977_v48  }
 0x247   : > { %1436 = vperm.xlu2 %2303, %v2933_v29   ;;  %1440 = vperm.xlu1 %2304, %v2939_v3  }
 0x24e   : > { %1476 = vperm.xlu0 %2305, %v2992_v42  }
 0x24f   : > { %1448 = vperm.xlu2 %2303, %v2945_v1   ;;  %1452 = vperm.xlu1 %2304, %v2948_v36  }
 0x256   : > { %1488 = vperm.xlu0 %2305, %v3007_v28  }
 0x257   : > { %1456 = vperm.xlu2 %2303, %v2959_v51   ;;  %1460 = vperm.xlu1 %2304, %v2962_v26  }
 0x258   : > { %v3347_v0 = vpop.permute.xlu0 %1309 }
 0x259   : > { %v3345_v9 = vpop.permute.xlu2 %1317  ;;  %3988 = vst [vmem:[#allocation65_spill] sm:$0xff] %v3347_v0 }
 0x25a   : > { %3987 = vst [vmem:[#allocation64_spill] sm:$0xff] %v3345_v9 }
 0x25e   : > { %1500 = vperm.xlu0 %2305, %v3022_v34  }
 0x25f   : > { %1468 = vperm.xlu2 %2303, %v2974_v58   ;;  %1472 = vperm.xlu1 %2304, %v2956_v10  }
 0x260   : > { %v3356_v63 = vpop.permute.xlu0 %1315 }
 0x261   : > { %v3352_v57 = vpop.permute.xlu1 %1307  ;;  %v3354_v45 = vpop.permute.xlu2 %1323  ;;  %3991 = vst [vmem:[#allocation68_spill] sm:$0xff] %v3356_v63 }
 0x262   : > { %3989 = vst [vmem:[#allocation66_spill] sm:$0xff] %v3352_v57 }
 0x263   : > { %3990 = vst [vmem:[#allocation67_spill] sm:$0xff] %v3354_v45 }
 0x266   : > { %1512 = vperm.xlu0 %2305, %v3037_v41  }
 0x267   : > { %1480 = vperm.xlu2 %2303, %v2989_v50   ;;  %1484 = vperm.xlu1 %2304, %v2971_v19  }
 0x268   : > { %v3365_v52 = vpop.permute.xlu0 %1321 }
 0x269   : > { %v3361_v12 = vpop.permute.xlu1 %1313  ;;  %v3363_v37 = vpop.permute.xlu2 %1329  ;;  %3994 = vst [vmem:[#allocation71_spill] sm:$0xff] %v3365_v52 }
 0x26a   : > { %3992 = vst [vmem:[#allocation69_spill] sm:$0xff] %v3361_v12 }
 0x26b   : > { %3993 = vst [vmem:[#allocation70_spill] sm:$0xff] %v3363_v37 }
 0x26e   : > { %1524 = vperm.xlu0 %2305, %v3052_v62  }
 0x26f   : > { %1492 = vperm.xlu2 %2303, %v3004_v16   ;;  %1496 = vperm.xlu1 %2304, %v2986_v21  }
 0x270   : > { %v3374_v45 = vpop.permute.xlu0 %1327 }
 0x271   : > { %v3370_v35 = vpop.permute.xlu2 %1335  ;;  %v3372_v31 = vpop.permute.xlu1 %1319 }
 0x272   : > { %3995 = vst [vmem:[#allocation72_spill] sm:$0xff] %v3370_v35 }
 0x273   : > { %3996 = vst [vmem:[#allocation73_spill] sm:$0xff] %v3372_v31 }
 0x276   : > { %1536 = vperm.xlu0 %2305, %v3067_v14  }
 0x277   : > { %1504 = vperm.xlu2 %2303, %v3019_v61   ;;  %1508 = vperm.xlu1 %2304, %v3001_v5  }
 0x278   : > { %v3383_v15 = vpop.permute.xlu0 %1333 }
 0x279   : > { %v3379_v37 = vpop.permute.xlu2 %1341  ;;  %v3381_v9 = vpop.permute.xlu1 %1325 }
 0x27a   : > { %3997 = vst [vmem:[#allocation74_spill] sm:$0xff] %v3381_v9 }
 0x27e   : > { %1548 = vperm.xlu0 %2305, %v3078_v13  }
 0x27f   : > { %1516 = vperm.xlu2 %2303, %v3034_v8   ;;  %1520 = vperm.xlu1 %2304, %v3016_v43  }
 0x280   : > { %v3392_v52 = vpop.permute.xlu0 %1339 }
 0x281   : > { %v3388_v35 = vpop.permute.xlu2 %1347  ;;  %v3390_v31 = vpop.permute.xlu1 %1331  ;;  %4000 = vst [vmem:[#allocation77_spill] sm:$0xff] %v3392_v52 }
 0x282   : > { %3998 = vst [vmem:[#allocation75_spill] sm:$0xff] %v3388_v35 }
 0x283   : > { %3999 = vst [vmem:[#allocation76_spill] sm:$0xff] %v3390_v31 }
 0x286   : > { %1560 = vperm.xlu0 %2305, %v3085_v32  }
 0x287   : > { %1528 = vperm.xlu2 %2303, %v3049_v7   ;;  %1532 = vperm.xlu1 %2304, %v3031_v40  }
 0x288   : > { %v3401_v63 = vpop.permute.xlu0 %1345 }
 0x289   : > { %v3397_v9 = vpop.permute.xlu2 %1353  ;;  %v3399_v12 = vpop.permute.xlu1 %1337  ;;  %4002 = vst [vmem:[#allocation79_spill] sm:$0xff] %v3401_v63 }
 0x28a   : > { %4001 = vst [vmem:[#allocation78_spill] sm:$0xff] %v3397_v9 }
 0x28f   : > { %1540 = vperm.xlu2 %2303, %v3064_v53   ;;  %1544 = vperm.xlu1 %2304, %v3046_v25  }
 0x290   : > { %v3409_v0 = vpop.permute.xlu0 %1351 }
 0x291   : > { %v3405_v57 = vpop.permute.xlu2 %1359  ;;  %v3407_v31 = vpop.permute.xlu1 %1343  ;;  %4004 = vst [vmem:[#allocation81_spill] sm:$0xff] %v3409_v0 }
 0x292   : > { %4003 = vst [vmem:[#allocation80_spill] sm:$0xff] %v3405_v57 }
 0x297   : > { %1552 = vperm.xlu2 %2303, %v3075_v59   ;;  %1556 = vperm.xlu1 %2304, %v3061_v2  }
 0x298   : > { %v3417_v13 = vpop.permute.xlu0 %1357 }
 0x299   : > { %v3413_v32 = vpop.permute.xlu2 %1365  ;;  %v3415_v9 = vpop.permute.xlu1 %1349  ;;  %4006 = vst [vmem:[#allocation83_spill] sm:$0xff] %v3417_v13 }
 0x29a   : > { %4005 = vst [vmem:[#allocation82_spill] sm:$0xff] %v3413_v32 }
 0x2a0   : > { %v3422_v57 = vpop.permute.xlu0 %1363 }
 0x2a1   : > { %v1437_v63 = vpop.permute.xlu2 %1436  ;;  %v3420_v25 = vpop.permute.xlu1 %1355  ;;  %4008 = vst [vmem:[#allocation85_spill] sm:$0xff] %v3422_v57 }
 0x2a2   : > { %v1563_v52 = vmul.f32 %v3200_v54, %v1437_v63  ;;  %4007 = vst [vmem:[#allocation84_spill] sm:$0xff] %v3420_v25 }
 0x2a4   : > { %1627 = vrot.lane.b32.xlu2 %v1563_v52, %s2459_s27 }
 0x2a8   : > { %v3428_v32 = vpop.permute.xlu0 %1369 }
 0x2a9   : > { %v1449_v0 = vpop.permute.xlu2 %1448  ;;  %v3426_v2 = vpop.permute.xlu1 %1361  ;;  %4009 = vst [vmem:[#allocation86_spill] sm:$0xff] %v3428_v32 }
 0x2aa   : > { %v1566_v35 = vmul.f32 %v3209_v39, %v1449_v0 }
 0x2ac   : > { %1633 = vrot.lane.b32.xlu2 %v1566_v35, %s2459_s27 }
 0x2b0   : > { %v1445_v63 = vpop.permute.xlu0 %1444 }
 0x2b1   : > { %v1457_v13 = vpop.permute.xlu2 %1456  ;;  %v3431_v14 = vpop.permute.xlu1 %1367  ;;  %v1565_v54 = vmul.f32 %v3188_v17, %v1445_v63 }
 0x2b2   : > { %4010 = vst [vmem:[#allocation87_spill] sm:$0xff] %v3431_v14  ;;  %v1568_v40 = vmul.f32 %v3218_v20, %v1457_v13 }
 0x2b3   : > { %1631 = vrot.lane.b32.xlu0 %v1565_v54, %s2459_s27 }
 0x2b8   : > { %v1465_v52 = vpop.permute.xlu0 %1464 }
 0x2b9   : > { %v1469_v57 = vpop.permute.xlu2 %1468  ;;  %v1441_v25 = vpop.permute.xlu1 %1440 }
 0x2ba   : > { %v1564_v0 = vmul.f32 %v3193_v46, %v1441_v25  ;;  %v1571_v32 = vmul.f32 %v3234_v56, %v1469_v57 }
 0x2bb   : > { %1637 = vrot.lane.b32.xlu0 %v1568_v40, %s2459_s27 }
 0x2bc   : > { %1629 = vrot.lane.b32.xlu1 %v1564_v0, %s2459_s27  ;;  %v1570_v0 = vmul.f32 %v3211_v30, %v1465_v52 }
 0x2c0   : > { %v1477_v63 = vpop.permute.xlu0 %1476 }
 0x2c1   : > { %v1481_v35 = vpop.permute.xlu2 %1480  ;;  %v1453_v39 = vpop.permute.xlu1 %1452  ;;  %v1573_v56 = vmul.f32 %v3220_v55, %v1477_v63 }
 0x2c2   : > { %v1567_v14 = vmul.f32 %v3202_v38, %v1453_v39  ;;  %v1574_v13 = vmul.f32 %v3247_v23, %v1481_v35 }
 0x2c3   : > { %1643 = vrot.lane.b32.xlu0 %v1571_v32, %s2459_s27 }
 0x2c4   : > { %1635 = vrot.lane.b32.xlu1 %v1567_v14, %s2459_s27 }
 0x2c8   : > { %v1489_v40 = vpop.permute.xlu0 %1488 }
 0x2c9   : > { %v1493_v54 = vpop.permute.xlu2 %1492  ;;  %v1461_v17 = vpop.permute.xlu1 %1460 }
 0x2ca   : > { %v1569_v25 = vmul.f32 %v3222_v60, %v1461_v17  ;;  %v1577_v14 = vmul.f32 %v3261_v4, %v1493_v54  ;;  %v4014_v4 = vld [vmem:[#allocation50_spill] sm:$0xff] }
 0x2cb   : > { %1649 = vrot.lane.b32.xlu0 %v1574_v13, %s2459_s27 }
 0x2cc   : > { %1639 = vrot.lane.b32.xlu2 %v1569_v25, %s2459_s27  ;;  %1641 = vrot.lane.b32.xlu1 %v1570_v0, %s2459_s27  ;;  %v4011_v0 = vld [vmem:[#allocation47_spill] sm:$0xff] }
 0x2cd   : > { %v1576_v23 = vmul.f32 %v4011_v0, %v1489_v40 }
 0x2d0   : > { %v1501_v17 = vpop.permute.xlu0 %1500 }
 0x2d1   : > { %v1505_v39 = vpop.permute.xlu2 %1504  ;;  %v1473_v57 = vpop.permute.xlu1 %1472  ;;  %v1579_v30 = vmul.f32 %v4014_v4, %v1501_v17 }
 0x2d2   : > { %v1572_v32 = vmul.f32 %v3236_v24, %v1473_v57  ;;  %v1580_v13 = vmul.f32 %v3274_v27, %v1505_v39  ;;  %v4012_v57 = vld [vmem:[#allocation59_spill] sm:$0xff]  ;;  %v2460_v39 = vmov 3   ;;  %v4020_v24 = vld [vmem:[#allocation58_spill] sm:$0xff] }
 0x2d3   : > { %1655 = vrot.lane.b32.xlu0 %v1577_v14, %s2459_s27  ;;  %2307 = vset.pattern.permute.xlu2 %v2460_v39 }
 0x2d4   : > { %1645 = vrot.lane.b32.xlu2 %v1572_v32, %s2459_s27  ;;  %1647 = vrot.lane.b32.xlu1 %v1573_v56, %s2459_s27  ;;  %v4013_v56 = vld [vmem:[#allocation55_spill] sm:$0xff] }
 0x2d5   : > { %2306 = vset.pattern.permute.xlu0 %v2460_v39  ;;  %2308 = vset.pattern.permute.xlu1 %v2460_v39 }
 0x2d8   : > { %v1513_v63 = vpop.permute.xlu0 %1512 }
 0x2d9   : > { %v1517_v52 = vpop.permute.xlu2 %1516  ;;  %v1485_v35 = vpop.permute.xlu1 %1484 }
 0x2da   : > { %v1575_v25 = vmul.f32 %v3249_v33, %v1485_v35  ;;  %v1583_v14 = vmul.f32 %v4012_v57, %v1517_v52  ;;  %v4015_v52 = vld [vmem:[#allocation57_spill] sm:$0xff]  ;;  %v4018_v33 = vld [vmem:[#allocation56_spill] sm:$0xff] }
 0x2db   : > { %1661 = vrot.lane.b32.xlu0 %v1580_v13, %s2459_s27 }
 0x2dc   : > { %1651 = vrot.lane.b32.xlu2 %v1575_v25, %s2459_s27  ;;  %1653 = vrot.lane.b32.xlu1 %v1576_v23, %s2459_s27  ;;  %v4016_v25 = vld [vmem:[#allocation53_spill] sm:$0xff] }
 0x2e0   : > { %v1525_v35 = vpop.permute.xlu0 %1524 }
 0x2e1   : > { %v1497_v54 = vpop.permute.xlu1 %1496  ;;  %v1529_v20 = vpop.permute.xlu2 %1528  ;;  %v1585_v38 = vmul.f32 %v4018_v33, %v1525_v35 }
 0x2e2   : > { %v1578_v32 = vmul.f32 %v4013_v56, %v1497_v54  ;;  %v1586_v40 = vmul.f32 %v3301_v6, %v1529_v20  ;;  %v1582_v54 = vmul.f32 %v4016_v25, %v1513_v63 }
 0x2e3   : > { %1667 = vrot.lane.b32.xlu0 %v1583_v14, %s2459_s27 }
 0x2e4   : > { %1657 = vrot.lane.b32.xlu2 %v1578_v32, %s2459_s27  ;;  %1659 = vrot.lane.b32.xlu1 %v1579_v30, %s2459_s27  ;;  %v4017_v30 = vld [vmem:[#allocation60_spill] sm:$0xff] }
 0x2e8   : > { %v1537_v20 = vpop.permute.xlu0 %1536 }
 0x2e9   : > { %v1509_v23 = vpop.permute.xlu1 %1508  ;;  %v1541_v17 = vpop.permute.xlu2 %1540  ;;  %v1588_v60 = vmul.f32 %v4020_v24, %v1537_v20 }
 0x2ea   : > { %v1581_v13 = vmul.f32 %v4015_v52, %v1509_v23  ;;  %v1589_v14 = vmul.f32 %v3315_v22, %v1541_v17 }
 0x2eb   : > { %1673 = vrot.lane.b32.xlu0 %v1586_v40, %s2459_s27 }
 0x2ec   : > { %1663 = vrot.lane.b32.xlu2 %v1581_v13, %s2459_s27  ;;  %1665 = vrot.lane.b32.xlu1 %v1582_v54, %s2459_s27  ;;  %v4019_v13 = vld [vmem:[#allocation62_spill] sm:$0xff] }
 0x2f0   : > { %v1549_v35 = vpop.permute.xlu0 %1548 }
 0x2f1   : > { %v1521_v32 = vpop.permute.xlu1 %1520  ;;  %v1553_v63 = vpop.permute.xlu2 %1552 }
 0x2f2   : > { %v1584_v39 = vmul.f32 %v4017_v30, %v1521_v32  ;;  %v1592_v40 = vmul.f32 %v3325_v18, %v1553_v63 }
 0x2f3   : > { %1679 = vrot.lane.b32.xlu0 %v1589_v14, %s2459_s27  ;;  %v4021_v14 = vld [vmem:[#allocation61_spill] sm:$0xff] }
 0x2f4   : > { %1669 = vrot.lane.b32.xlu2 %v1584_v39, %s2459_s27  ;;  %1671 = vrot.lane.b32.xlu1 %v1585_v38, %s2459_s27  ;;  %v1591_v38 = vmul.f32 %v4021_v14, %v1549_v35 }
 0x2f8   : > { %v1561_v39 = vpop.permute.xlu0 %1560 }
 0x2f9   : > { %v1533_v23 = vpop.permute.xlu1 %1532 }
 0x2fa   : > { %v1587_v54 = vmul.f32 %v4019_v13, %v1533_v23  ;;  %v1594_v23 = vmul.f32 %v3313_v11, %v1561_v39  ;;  %v4026_v39 = vld [vmem:[#allocation28_spill] sm:$0xff] }
 0x2fb   : > { %1685 = vrot.lane.b32.xlu0 %v1592_v40, %s2459_s27 }
 0x2fc   : > { %1675 = vrot.lane.b32.xlu2 %v1587_v54, %s2459_s27  ;;  %1677 = vrot.lane.b32.xlu1 %v1588_v60, %s2459_s27  ;;  %v4024_v54 = vld [vmem:[#allocation15_spill] sm:$0xff] }
 0x2fd   : > { %v1061_v35 = vmul.f32 %v3220_v55, %v4024_v54  ;;  %v4032_v54 = vld [vmem:[#allocation21_spill] sm:$0xff] }
 0x2fe   : > { %v3495_v60 = vpop.permute.xlu2 %1627 }
 0x301   : > { %v1545_v17 = vpop.permute.xlu1 %1544 }
 0x302   : > { %v1590_v32 = vmul.f32 %v3317_v49, %v1545_v17 }
 0x303   : > { %1756 = vperm.xlu0 %2306, %v2933_v29  }
 0x304   : > { %1681 = vrot.lane.b32.xlu2 %v1590_v32, %s2459_s27  ;;  %1683 = vrot.lane.b32.xlu1 %v1591_v38, %s2459_s27 }
 0x306   : > { %v3503_v29 = vpop.permute.xlu2 %1633 }
 0x309   : > { %v1557_v20 = vpop.permute.xlu1 %1556 }
 0x30a   : > { %v1593_v63 = vmul.f32 %v3327_v44, %v1557_v20  ;;  %v1072_v20 = vmul.f32 %v4017_v30, %v4026_v39  ;;  %v4038_v39 = vld [vmem:[#allocation77_spill] sm:$0xff] }
 0x30b   : > { %1776 = vperm.xlu0 %2306, %v2959_v51  }
 0x30c   : > { %1687 = vrot.lane.b32.xlu2 %v1593_v63, %s2459_s27  ;;  %1689 = vrot.lane.b32.xlu1 %v1594_v23, %s2459_s27  ;;  %v4028_v63 = vld [vmem:[#allocation29_spill] sm:$0xff] }
 0x313   : > { %1788 = vperm.xlu0 %2306, %v2974_v58  }
 0x314   : > { %1760 = vperm.xlu2 %2307, %v2939_v3   ;;  %1764 = vperm.xlu1 %2308, %v2930_v47  }
 0x31b   : > { %1800 = vperm.xlu0 %2306, %v2989_v50  }
 0x31c   : > { %1768 = vperm.xlu2 %2307, %v2945_v1   ;;  %1772 = vperm.xlu1 %2308, %v2948_v36  }
 0x323   : > { %1812 = vperm.xlu0 %2306, %v3004_v16  }
 0x324   : > { %1780 = vperm.xlu2 %2307, %v2962_v26   ;;  %1784 = vperm.xlu1 %2308, %v2977_v48   ;;  %v4022_v48 = vld [vmem:[#allocation22_spill] sm:$0xff] }
 0x325   : > { %v3510_v3 = vpop.permute.xlu0 %1631  ;;  %v1066_v50 = vmul.f32 %v4013_v56, %v4022_v48 }
 0x326   : > { %v3508_v51 = vpop.permute.xlu2 %1639 }
 0x32b   : > { %1824 = vperm.xlu0 %2306, %v3019_v61  }
 0x32c   : > { %1792 = vperm.xlu2 %2307, %v2956_v10   ;;  %1796 = vperm.xlu1 %2308, %v2992_v42   ;;  %v1418_v42 = vadd.f32 %v3399_v12, %v1066_v50 }
 0x32d   : > { %v3519_v36 = vpop.permute.xlu0 %1637 }
 0x32e   : > { %v3515_v47 = vpop.permute.xlu2 %1645  ;;  %v3517_v1 = vpop.permute.xlu1 %1629 }
 0x333   : > { %1836 = vperm.xlu0 %2306, %v3034_v8   ;;  %v4023_v8 = vld [vmem:[#allocation25_spill] sm:$0xff] }
 0x334   : > { %1804 = vperm.xlu2 %2307, %v2971_v19   ;;  %1808 = vperm.xlu1 %2308, %v3007_v28   ;;  %v1069_v40 = vmul.f32 %v4015_v52, %v4023_v8 }
 0x335   : > { %v3528_v10 = vpop.permute.xlu0 %1643 }
 0x336   : > { %v3524_v26 = vpop.permute.xlu2 %1651  ;;  %v3526_v58 = vpop.permute.xlu1 %1635 }
 0x33b   : > { %1848 = vperm.xlu0 %2306, %v3049_v7  }
 0x33c   : > { %1816 = vperm.xlu2 %2307, %v2986_v21   ;;  %1820 = vperm.xlu1 %2308, %v3022_v34   ;;  %v1421_v21 = vadd.f32 %v3407_v31, %v1069_v40  ;;  %v1413_v34 = vadd.f32 %v3374_v45, %v1061_v35  ;;  %v1068_v31 = vmul.f32 %v3274_v27, %v4028_v63  ;;  %v4034_v35 = vld [vmem:[#allocation7_spill] sm:$0xff] }
 0x33d   : > { %v3540_v61 = vpop.permute.xlu0 %1649 }
 0x33e   : > { %v1658_v19 = vpop.permute.xlu2 %1657  ;;  %v3538_v28 = vpop.permute.xlu1 %1641  ;;  %v1420_v45 = vadd.f32 %v3379_v37, %v1068_v31 }
 0x33f   : > { %v3536_v16 = vadd.f32 %v1658_v19, %v1418_v42 }
 0x343   : > { %1860 = vperm.xlu0 %2306, %v3064_v53  }
 0x344   : > { %1828 = vperm.xlu2 %2307, %v3001_v5   ;;  %1832 = vperm.xlu1 %2308, %v3037_v41   ;;  %v4027_v5 = vld [vmem:[#allocation18_spill] sm:$0xff]  ;;  %v1424_v41 = vadd.f32 %v3415_v9, %v1072_v20  ;;  %v1067_v9 = vmul.f32 %v4014_v4, %v4032_v54  ;;  %v4044_v54 = vld [vmem:[#allocation8_spill] sm:$0xff] }
 0x345   : > { %v3553_v32 = vpop.permute.xlu0 %1655  ;;  %v1064_v53 = vmul.f32 %v4011_v0, %v4027_v5 }
 0x346   : > { %v1664_v7 = vpop.permute.xlu2 %1663  ;;  %v1648_v17 = vpop.permute.xlu1 %1647  ;;  %v1419_v20 = vadd.f32 %v4038_v39, %v1067_v9 }
 0x347   : > { %v3551_v12 = vadd.f32 %v1664_v7, %v1421_v21  ;;  %v3555_v38 = vadd.f32 %v1648_v17, %v1413_v34  ;;  %v1416_v23 = vadd.f32 %v3383_v15, %v1064_v53  ;;  %v4035_v15 = vld [vmem:[#allocation84_spill] sm:$0xff]  ;;  %v4036_v34 = vld [vmem:[#allocation2_spill] sm:$0xff]  ;;  %v4037_v7 = vld [vmem:[#allocation75_spill] sm:$0xff] }
 0x349   : > { %4025 = vst [vmem:[#allocation47_spill] sm:$0xff] %v3551_v12 }
 0x34b   : > { %1872 = vperm.xlu0 %2306, %v3075_v59  }
 0x34c   : > { %1840 = vperm.xlu2 %2307, %v3016_v43   ;;  %1844 = vperm.xlu1 %2308, %v3052_v62   ;;  %v4031_v43 = vld [vmem:[#allocation31_spill] sm:$0xff]  ;;  %v4033_v62 = vld [vmem:[#allocation32_spill] sm:$0xff] }
 0x34d   : > { %v1662_v19 = vpop.permute.xlu0 %1661  ;;  %v1075_v59 = vmul.f32 %v4019_v13, %v4031_v43  ;;  %v1071_v37 = vmul.f32 %v4012_v57, %v4033_v62  ;;  %v4043_v43 = vld [vmem:[#allocation35_spill] sm:$0xff] }
 0x34e   : > { %v1670_v48 = vpop.permute.xlu2 %1669  ;;  %v1654_v42 = vpop.permute.xlu1 %1653  ;;  %v3573_v40 = vadd.f32 %v1662_v19, %v1420_v45  ;;  %v4045_v62 = vld [vmem:[#allocation3_spill] sm:$0xff] }
 0x34f   : > { %v3569_v50 = vadd.f32 %v1670_v48, %v1424_v41  ;;  %v3571_v8 = vadd.f32 %v1654_v42, %v1416_v23  ;;  %v1427_v21 = vadd.f32 %v4035_v15, %v1075_v59  ;;  %v1423_v17 = vadd.f32 %v4037_v7, %v1071_v37  ;;  %v4041_v23 = vld [vmem:[#allocation34_spill] sm:$0xff]  ;;  %v4042_v42 = vld [vmem:[#allocation24_spill] sm:$0xff]  ;;  %v4047_v15 = vld [vmem:[#allocation79_spill] sm:$0xff] }
 0x350   : > { %4030 = vst [vmem:[#allocation55_spill] sm:$0xff] %v3573_v40  ;;  %v1078_v48 = vmul.f32 %v3317_v49, %v4041_v23  ;;  %v1070_v19 = vmul.f32 %v4016_v25, %v4042_v42  ;;  %v1074_v59 = vmul.f32 %v3301_v6, %v4043_v43  ;;  %v4046_v37 = vld [vmem:[#allocation78_spill] sm:$0xff]  ;;  %v4051_v23 = vld [vmem:[#allocation27_spill] sm:$0xff]  ;;  %v4053_v43 = vld [vmem:[#allocation9_spill] sm:$0xff] }
 0x351   : > { %4029 = vst [vmem:[#allocation59_spill] sm:$0xff] %v3569_v50  ;;  %v4082_v40 = vld [vmem:[#allocation48_spill] sm:$0xff] }
 0x352   : > { %v1430_v9 = vadd.f32 %v3426_v2, %v1078_v48  ;;  %v1073_v2 = vmul.f32 %v4018_v33, %v4051_v23  ;;  %v4052_v48 = vld [vmem:[#allocation38_spill] sm:$0xff] }
 0x353   : > { %v1077_v42 = vmul.f32 %v3315_v22, %v4052_v48  ;;  %v4061_v23 = vld [vmem:[#allocation30_spill] sm:$0xff] }
 0x354   : > { %1852 = vperm.xlu2 %2307, %v4034_v35   ;;  %1856 = vperm.xlu1 %2308, %v4036_v34   ;;  %v1426_v35 = vadd.f32 %v4046_v37, %v1074_v59  ;;  %v4057_v37 = vld [vmem:[#allocation81_spill] sm:$0xff]  ;;  %v1076_v48 = vmul.f32 %v4020_v24, %v4061_v23 }
 0x355   : > { %v1668_v31 = vpop.permute.xlu0 %1667 }
 0x356   : > { %v1676_v5 = vpop.permute.xlu2 %1675  ;;  %v1660_v63 = vpop.permute.xlu1 %1659  ;;  %v3590_v45 = vadd.f32 %v1668_v31, %v1423_v17 }
 0x357   : > { %v3586_v53 = vadd.f32 %v1676_v5, %v1427_v21  ;;  %v3588_v41 = vadd.f32 %v1660_v63, %v1419_v20  ;;  %v1422_v21 = vadd.f32 %v4047_v15, %v1070_v19  ;;  %v4050_v63 = vld [vmem:[#allocation37_spill] sm:$0xff]  ;;  %v4054_v19 = vld [vmem:[#allocation87_spill] sm:$0xff] }
 0x358   : > { %4040 = vst [vmem:[#allocation57_spill] sm:$0xff] %v3590_v45  ;;  %v1081_v31 = vmul.f32 %v3327_v44, %v4050_v63 }
 0x359   : > { %4039 = vst [vmem:[#allocation50_spill] sm:$0xff] %v3586_v53 }
 0x35a   : > { %v1433_v59 = vadd.f32 %v4054_v19, %v1081_v31  ;;  %v4063_v19 = vld [vmem:[#allocation82_spill] sm:$0xff] }
 0x35c   : > { %1864 = vperm.xlu2 %2307, %v4044_v54   ;;  %1868 = vperm.xlu1 %2308, %v4045_v62   ;;  %v4055_v54 = vld [vmem:[#allocation4_spill] sm:$0xff] }
 0x35d   : > { %v1674_v39 = vpop.permute.xlu0 %1673 }
 0x35e   : > { %v1682_v34 = vpop.permute.xlu2 %1681  ;;  %v1666_v17 = vpop.permute.xlu1 %1665  ;;  %v3607_v5 = vadd.f32 %v1674_v39, %v1426_v35  ;;  %v1425_v35 = vadd.f32 %v4057_v37, %v1073_v2 }
 0x35f   : > { %v3603_v7 = vadd.f32 %v1682_v34, %v1430_v9  ;;  %v3605_v20 = vadd.f32 %v1666_v17, %v1422_v21  ;;  %v4056_v9 = vld [vmem:[#allocation80_spill] sm:$0xff] }
 0x360   : > { %4049 = vst [vmem:[#allocation60_spill] sm:$0xff] %v3607_v5  ;;  %v1429_v62 = vadd.f32 %v4056_v9, %v1077_v42  ;;  %v4064_v42 = vld [vmem:[#allocation83_spill] sm:$0xff] }
 0x361   : > { %4048 = vst [vmem:[#allocation53_spill] sm:$0xff] %v3603_v7  ;;  %v1428_v9 = vadd.f32 %v4064_v42, %v1076_v48  ;;  %v4070_v42 = vld [vmem:[#allocation41_spill] sm:$0xff]  ;;  %v4076_v5 = vld [vmem:[#allocation39_spill] sm:$0xff] }
 0x364   : > { %1876 = vperm.xlu2 %2307, %v4053_v43   ;;  %1880 = vperm.xlu1 %2308, %v4055_v54   ;;  %v4062_v43 = vld [vmem:[#allocation40_spill] sm:$0xff] }
 0x365   : > { %v1680_v17 = vpop.permute.xlu0 %1679  ;;  %v1080_v31 = vmul.f32 %v3325_v18, %v4062_v43 }
 0x366   : > { %v1688_v15 = vpop.permute.xlu2 %1687  ;;  %v1672_v34 = vpop.permute.xlu1 %1671  ;;  %v3624_v63 = vadd.f32 %v1680_v17, %v1429_v62  ;;  %v4067_v62 = vld [vmem:[#allocation33_spill] sm:$0xff] }
 0x367   : > { %v3620_v21 = vadd.f32 %v1688_v15, %v1433_v59  ;;  %v3622_v39 = vadd.f32 %v1672_v34, %v1425_v35  ;;  %v1432_v54 = vadd.f32 %v4063_v19, %v1080_v31  ;;  %v1079_v34 = vmul.f32 %v4021_v14, %v4067_v62  ;;  %v4068_v17 = vld [vmem:[#allocation85_spill] sm:$0xff]  ;;  %v4073_v62 = vld [vmem:[#allocation43_spill] sm:$0xff] }
 0x368   : > { %4060 = vst [vmem:[#allocation58_spill] sm:$0xff] %v3624_v63 }
 0x369   : > { %4058 = vst [vmem:[#allocation56_spill] sm:$0xff] %v3620_v21  ;;  %v1431_v23 = vadd.f32 %v4068_v17, %v1079_v34 }
 0x36a   : > { %4059 = vst [vmem:[#allocation62_spill] sm:$0xff] %v3622_v39 }
 0x36d   : > { %v1686_v15 = vpop.permute.xlu0 %1685 }
 0x36e   : > { %v1761_v2 = vpop.permute.xlu2 %1760  ;;  %v1678_v37 = vpop.permute.xlu1 %1677  ;;  %v3635_v35 = vadd.f32 %v1686_v15, %v1432_v54 }
 0x36f   : > { %v1884_v59 = vmul.f32 %v3193_v46, %v1761_v2  ;;  %v3633_v21 = vadd.f32 %v1678_v37, %v1428_v9  ;;  %v4071_v9 = vld [vmem:[#allocation36_spill] sm:$0xff]  ;;  %v4072_v37 = vld [vmem:[#allocation86_spill] sm:$0xff] }
 0x370   : > { %4066 = vst [vmem:[#allocation22_spill] sm:$0xff] %v3635_v35  ;;  %v1082_v54 = vmul.f32 %v3313_v11, %v4071_v9 }
 0x371   : > { %4065 = vst [vmem:[#allocation61_spill] sm:$0xff] %v3633_v21  ;;  %1949 = vrot.lane.b32.xlu2 %v1884_v59, %s2461_s28 }
 0x372   : > { %v1434_v15 = vadd.f32 %v4072_v37, %v1082_v54  ;;  %v4077_v37 = vld [vmem:[#allocation49_spill] sm:$0xff] }
 0x375   : > { %v1757_v48 = vpop.permute.xlu0 %1756 }
 0x376   : > { %v1769_v43 = vpop.permute.xlu2 %1768  ;;  %v1684_v31 = vpop.permute.xlu1 %1683  ;;  %v1883_v2 = vmul.f32 %v4070_v42, %v1757_v48 }
 0x377   : > { %v3641_v19 = vadd.f32 %v1684_v31, %v1431_v23  ;;  %v1886_v7 = vmul.f32 %v4073_v62, %v1769_v43  ;;  %v4075_v31 = vld [vmem:[#allocation46_spill] sm:$0xff] }
 0x378   : > { %1947 = vrot.lane.b32.xlu0 %v1883_v2, %s2461_s28  ;;  %v4078_v43 = vld [vmem:[#allocation42_spill] sm:$0xff] }
 0x379   : > { %4069 = vst [vmem:[#allocation25_spill] sm:$0xff] %v3641_v19 }
 0x37d   : > { %v1777_v63 = vpop.permute.xlu0 %1776 }
 0x37e   : > { %v1781_v59 = vpop.permute.xlu2 %1780  ;;  %v1690_v35 = vpop.permute.xlu1 %1689 }
 0x37f   : > { %v3649_v34 = vadd.f32 %v1690_v35, %v1434_v15  ;;  %v1889_v48 = vmul.f32 %v4075_v31, %v1781_v59  ;;  %v4079_v15 = vld [vmem:[#allocation45_spill] sm:$0xff] }
 0x380   : > { %1953 = vrot.lane.b32.xlu0 %v1886_v7, %s2461_s28 }
 0x381   : > { %4074 = vst [vmem:[#allocation15_spill] sm:$0xff] %v3649_v34  ;;  %v1888_v34 = vmul.f32 %v4079_v15, %v1777_v63 }
 0x385   : > { %v1789_v53 = vpop.permute.xlu0 %1788 }
 0x386   : > { %v1793_v17 = vpop.permute.xlu2 %1792  ;;  %v1765_v23 = vpop.permute.xlu1 %1764  ;;  %v1891_v21 = vmul.f32 %v4082_v40, %v1789_v53 }
 0x387   : > { %v1885_v2 = vmul.f32 %v4076_v5, %v1765_v23  ;;  %v1892_v45 = vmul.f32 %v4077_v37, %v1793_v17 }
 0x388   : > { %1959 = vrot.lane.b32.xlu0 %v1889_v48, %s2461_s28  ;;  %v4081_v48 = vld [vmem:[#allocation44_spill] sm:$0xff] }
 0x389   : > { %1951 = vrot.lane.b32.xlu1 %v1885_v2, %s2461_s28  ;;  %v4080_v2 = vld [vmem:[#allocation52_spill] sm:$0xff] }
 0x38d   : > { %v1801_v7 = vpop.permute.xlu0 %1800 }
 0x38e   : > { %v1805_v9 = vpop.permute.xlu2 %1804  ;;  %v1773_v54 = vpop.permute.xlu1 %1772 }
 0x38f   : > { %v1887_v35 = vmul.f32 %v4078_v43, %v1773_v54  ;;  %v1895_v19 = vmul.f32 %v4080_v2, %v1805_v9 }
 0x390   : > { %1965 = vrot.lane.b32.xlu0 %v1892_v45, %s2461_s28 }
 0x391   : > { %1955 = vrot.lane.b32.xlu2 %v1887_v35, %s2461_s28  ;;  %1957 = vrot.lane.b32.xlu1 %v1888_v34, %s2461_s28  ;;  %v4083_v35 = vld [vmem:[#allocation51_spill] sm:$0xff] }
 0x392   : > { %v1894_v12 = vmul.f32 %v4083_v35, %v1801_v7 }
 0x395   : > { %v1813_v63 = vpop.permute.xlu0 %1812 }
 0x396   : > { %v1817_v59 = vpop.permute.xlu2 %1816  ;;  %v1785_v23 = vpop.permute.xlu1 %1784 }
 0x397   : > { %v1890_v50 = vmul.f32 %v4081_v48, %v1785_v23  ;;  %v1898_v45 = vmul.f32 %v4013_v56, %v1817_v59  ;;  %v4084_v23 = vld [vmem:[#allocation54_spill] sm:$0xff] }
 0x398   : > { %1971 = vrot.lane.b32.xlu0 %v1895_v19, %s2461_s28  ;;  %v1897_v39 = vmul.f32 %v4084_v23, %v1813_v63 }
 0x399   : > { %1961 = vrot.lane.b32.xlu2 %v1890_v50, %s2461_s28  ;;  %1963 = vrot.lane.b32.xlu1 %v1891_v21, %s2461_s28 }
 0x39d   : > { %v1825_v50 = vpop.permute.xlu0 %1824 }
 0x39e   : > { %v1829_v17 = vpop.permute.xlu2 %1828  ;;  %v1797_v54 = vpop.permute.xlu1 %1796 }
 0x39f   : > { %v1893_v34 = vmul.f32 %v3220_v55, %v1797_v54  ;;  %v1901_v21 = vmul.f32 %v4015_v52, %v1829_v17  ;;  %v1900_v54 = vmul.f32 %v3274_v27, %v1825_v50 }
 0x3a0   : > { %1977 = vrot.lane.b32.xlu0 %v1898_v45, %s2461_s28 }
 0x3a1   : > { %1967 = vrot.lane.b32.xlu2 %v1893_v34, %s2461_s28  ;;  %1969 = vrot.lane.b32.xlu1 %v1894_v12, %s2461_s28 }
 0x3a5   : > { %v1837_v12 = vpop.permute.xlu0 %1836 }
 0x3a6   : > { %v1841_v53 = vpop.permute.xlu2 %1840  ;;  %v1809_v19 = vpop.permute.xlu1 %1808  ;;  %v1903_v63 = vmul.f32 %v4012_v57, %v1837_v12  ;;  %v4087_v12 = vld [vmem:[#allocation11_spill] sm:$0xff] }
 0x3a7   : > { %v1896_v9 = vmul.f32 %v4011_v0, %v1809_v19  ;;  %v1904_v7 = vmul.f32 %v4017_v30, %v1841_v53  ;;  %v4086_v19 = vld [vmem:[#allocation65_spill] sm:$0xff] }
 0x3a8   : > { %1983 = vrot.lane.b32.xlu0 %v1901_v21, %s2461_s28 }
 0x3a9   : > { %1973 = vrot.lane.b32.xlu2 %v1896_v9, %s2461_s28  ;;  %1975 = vrot.lane.b32.xlu1 %v1897_v39, %s2461_s28 }
 0x3ad   : > { %v1849_v30 = vpop.permute.xlu0 %1848 }
 0x3ae   : > { %v1853_v55 = vpop.permute.xlu2 %1852  ;;  %v1821_v56 = vpop.permute.xlu1 %1820  ;;  %v1906_v34 = vmul.f32 %v3301_v6, %v1849_v30 }
 0x3af   : > { %v1899_v59 = vmul.f32 %v4014_v4, %v1821_v56  ;;  %v1907_v52 = vmul.f32 %v4019_v13, %v1853_v55  ;;  %v4085_v13 = vld [vmem:[#allocation5_spill] sm:$0xff] }
 0x3b0   : > { %1989 = vrot.lane.b32.xlu0 %v1904_v7, %s2461_s28  ;;  %v1052_v50 = vmul.f32 %v3193_v46, %v4085_v13 }
 0x3b1   : > { %1979 = vrot.lane.b32.xlu2 %v1899_v59, %s2461_s28  ;;  %1981 = vrot.lane.b32.xlu1 %v1900_v54, %s2461_s28  ;;  %v1051_v59 = vmul.f32 %v4070_v42, %v4087_v12  ;;  %v4088_v54 = vld [vmem:[#allocation14_spill] sm:$0xff] }
 0x3b2   : > { %v1404_v21 = vadd.f32 %v4086_v19, %v1052_v50 }
 0x3b4   : > { %v1724_v9 = vadd.f32 %v3517_v1, %v1404_v21 }
 0x3b6   : > { %v1833_v0 = vpop.permute.xlu1 %1832  ;;  %v1865_v17 = vpop.permute.xlu2 %1864 }
 0x3b7   : > { %v1902_v39 = vmul.f32 %v4016_v25, %v1833_v0  ;;  %v1910_v27 = vmul.f32 %v3317_v49, %v1865_v17  ;;  %v1861_v25 = vpop.permute.xlu0 %1860  ;;  %v1055_v0 = vmul.f32 %v4078_v43, %v4088_v54 }
 0x3b8   : > { %1995 = vrot.lane.b32.xlu0 %v1907_v52, %s2461_s28  ;;  %v1909_v6 = vmul.f32 %v3315_v22, %v1861_v25  ;;  %v4094_v25 = vld [vmem:[#allocation71_spill] sm:$0xff] }
 0x3b9   : > { %1985 = vrot.lane.b32.xlu2 %v1902_v39, %s2461_s28  ;;  %1987 = vrot.lane.b32.xlu1 %v1903_v63, %s2461_s28 }
 0x3be   : > { %v1845_v4 = vpop.permute.xlu1 %1844  ;;  %v1877_v57 = vpop.permute.xlu2 %1876 }
 0x3bf   : > { %v1905_v45 = vmul.f32 %v4018_v33, %v1845_v4  ;;  %v1913_v49 = vmul.f32 %v3327_v44, %v1877_v57  ;;  %v4093_v57 = vld [vmem:[#allocation69_spill] sm:$0xff] }
 0x3c0   : > { %2001 = vrot.lane.b32.xlu0 %v1910_v27, %s2461_s28 }
 0x3c1   : > { %1991 = vrot.lane.b32.xlu2 %v1905_v45, %s2461_s28  ;;  %1993 = vrot.lane.b32.xlu1 %v1906_v34, %s2461_s28  ;;  %v4091_v45 = vld [vmem:[#allocation6_spill] sm:$0xff]  ;;  %v4092_v34 = vld [vmem:[#allocation12_spill] sm:$0xff] }
 0x3c2   : > { %v1054_v42 = vmul.f32 %v4073_v62, %v4091_v45  ;;  %v1058_v43 = vmul.f32 %v4081_v48, %v4092_v34 }
 0x3c6   : > { %v1857_v53 = vpop.permute.xlu1 %1856 }
 0x3c7   : > { %v1908_v33 = vmul.f32 %v4020_v24, %v1857_v53  ;;  %v1873_v24 = vpop.permute.xlu0 %1872 }
 0x3c8   : > { %2007 = vrot.lane.b32.xlu0 %v1913_v49, %s2461_s28  ;;  %v1912_v55 = vmul.f32 %v3325_v18, %v1873_v24  ;;  %v4090_v18 = vld [vmem:[#allocation68_spill] sm:$0xff]  ;;  %v4095_v49 = vld [vmem:[#allocation13_spill] sm:$0xff] }
 0x3c9   : > { %1997 = vrot.lane.b32.xlu2 %v1908_v33, %s2461_s28  ;;  %1999 = vrot.lane.b32.xlu1 %v1909_v6, %s2461_s28  ;;  %v1407_v39 = vadd.f32 %v4090_v18, %v1055_v0  ;;  %v1053_v48 = vmul.f32 %v4076_v5, %v4095_v49  ;;  %v4096_v33 = vld [vmem:[#allocation17_spill] sm:$0xff] }
 0x3ca   : > { %v1057_v6 = vmul.f32 %v4075_v31, %v4096_v33  ;;  %v4099_v31 = vld [vmem:[#allocation10_spill] sm:$0xff] }
 0x3cb   : > { %v1950_v46 = vpop.permute.xlu2 %1949  ;;  %v1727_v17 = vadd.f32 %v3526_v58, %v1407_v39  ;;  %v1410_v58 = vadd.f32 %v4094_v25, %v1058_v43  ;;  %v1056_v12 = vmul.f32 %v4079_v15, %v4099_v31 }
 0x3cc   : > { %v2044_v44 = vadd.f32 %v1950_v46, %v1724_v9 }
 0x3cd   : > { %v1730_v50 = vadd.f32 %v3538_v28, %v1410_v58  ;;  %v4098_v28 = vld [vmem:[#allocation73_spill] sm:$0xff]  ;;  %v4107_v58 = vld [vmem:[#allocation23_spill] sm:$0xff] }
 0x3ce   : > { %2077 = vst.msk [vmem:[%s3712_s4 + $0x8] sm:$0xff] %vm2075_vm0, %v2044_v44  ;;  %v1869_v22 = vpop.permute.xlu1 %1868  ;;  %v1409_v46 = vadd.f32 %v4098_v28, %v1057_v6 }
 0x3cf   : > { %v1911_v1 = vmul.f32 %v4021_v14, %v1869_v22  ;;  %v4089_v14 = vld [vmem:[#allocation66_spill] sm:$0xff] }
 0x3d0   : > { %v1403_v52 = vadd.f32 %v4089_v14, %v1051_v59  ;;  %v1729_v24 = vadd.f32 %v3508_v51, %v1409_v46  ;;  %v4100_v59 = vld [vmem:[#allocation16_spill] sm:$0xff] }
 0x3d1   : > { %2003 = vrot.lane.b32.xlu2 %v1911_v1, %s2461_s28  ;;  %2005 = vrot.lane.b32.xlu1 %v1912_v55, %s2461_s28  ;;  %v1060_v54 = vmul.f32 %v4077_v37, %v4100_v59  ;;  %v4101_v51 = vld [vmem:[#allocation64_spill] sm:$0xff]  ;;  %v4116_v59 = vld [vmem:[#allocation25_spill] sm:$0xff] }
 0x3d2   : > { %v1723_v63 = vadd.f32 %v3495_v60, %v1403_v52  ;;  %v1406_v60 = vadd.f32 %v4093_v57, %v1054_v42 }
 0x3d4   : > { %v1726_v13 = vadd.f32 %v3503_v29, %v1406_v60  ;;  %v4097_v29 = vld [vmem:[#allocation63_spill] sm:$0xff] }
 0x3d5   : > { %v1405_v9 = vadd.f32 %v4097_v29, %v1053_v48  ;;  %v4111_v29 = vld [vmem:[#allocation62_spill] sm:$0xff] }
 0x3d6   : > { %v1881_v56 = vpop.permute.xlu1 %1880 }
 0x3d7   : > { %v1914_v7 = vmul.f32 %v3313_v11, %v1881_v56  ;;  %v1725_v44 = vadd.f32 %v3510_v3, %v1405_v9  ;;  %v1408_v3 = vadd.f32 %v4101_v51, %v1056_v12 }
 0x3d9   : > { %2009 = vrot.lane.b32.xlu2 %v1914_v7, %s2461_s28  ;;  %v1728_v52 = vadd.f32 %v3519_v36, %v1408_v3 }
 0x3ea   : > { %v1948_v4 = vpop.permute.xlu0 %1947 }
 0x3eb   : > { %v1956_v30 = vpop.permute.xlu2 %1955  ;;  %v2043_v27 = vadd.f32 %v1948_v4, %v1723_v63 }
 0x3ec   : > { %v2047_v11 = vadd.f32 %v1956_v30, %v1727_v17  ;;  %v4103_v30 = vld [vmem:[#allocation20_spill] sm:$0xff] }
 0x3ed   : > { %2076 = vst.msk [vmem:[%s3712_s4] sm:$0xff] %vm2075_vm0, %v2043_v27  ;;  %v1059_v4 = vmul.f32 %v4082_v40, %v4103_v30 }
 0x3ee   : > { %2080 = vst.msk [vmem:[%s3712_s4 + $0x20] sm:$0xff] %vm2075_vm0, %v2047_v11  ;;  %v4104_v11 = vld [vmem:[#allocation19_spill] sm:$0xff] }
 0x3ef   : > { %v1063_v27 = vmul.f32 %v4080_v2, %v4104_v11 }
 0x3f2   : > { %v1954_v19 = vpop.permute.xlu0 %1953 }
 0x3f3   : > { %v1962_v53 = vpop.permute.xlu2 %1961  ;;  %v2046_v62 = vadd.f32 %v1954_v19, %v1726_v13  ;;  %v1062_v13 = vmul.f32 %v4083_v35, %v4107_v58  ;;  %v4109_v35 = vld [vmem:[#allocation26_spill] sm:$0xff] }
 0x3f4   : > { %v2050_v21 = vadd.f32 %v1962_v53, %v1730_v50  ;;  %v1065_v48 = vmul.f32 %v4084_v23, %v4109_v35 }
 0x3f5   : > { %2079 = vst.msk [vmem:[%s3712_s4 + $0x18] sm:$0xff] %vm2075_vm0, %v2046_v62 }
 0x3f6   : > { %2083 = vst.msk [vmem:[%s3712_s4 + $0x38] sm:$0xff] %vm2075_vm0, %v2050_v21 }
 0x3fa   : > { %v1960_v56 = vpop.permute.xlu0 %1959 }
 0x3fb   : > { %v1968_v22 = vpop.permute.xlu2 %1967  ;;  %v1952_v1 = vpop.permute.xlu1 %1951  ;;  %v2049_v7 = vadd.f32 %v1960_v56, %v1729_v24 }
 0x3fc   : > { %v2053_v5 = vadd.f32 %v1968_v22, %v3555_v38  ;;  %v2045_v55 = vadd.f32 %v1952_v1, %v1725_v44  ;;  %v4102_v38 = vld [vmem:[#allocation74_spill] sm:$0xff]  ;;  %v4112_v44 = vld [vmem:[#allocation47_spill] sm:$0xff] }
 0x3fd   : > { %2082 = vst.msk [vmem:[%s3712_s4 + $0x30] sm:$0xff] %vm2075_vm0, %v2049_v7  ;;  %v1412_v0 = vadd.f32 %v4102_v38, %v1060_v54  ;;  %v4115_v7 = vld [vmem:[#allocation59_spill] sm:$0xff]  ;;  %v4117_v38 = vld [vmem:[#allocation57_spill] sm:$0xff] }
 0x3fe   : > { %2086 = vst.msk [vmem:[%s3712_s4 + $0x50] sm:$0xff] %vm2075_vm0, %v2053_v5 }
 0x3ff   : > { %2078 = vst.msk [vmem:[%s3712_s4 + $0x10] sm:$0xff] %vm2075_vm0, %v2045_v55  ;;  %v1732_v14 = vadd.f32 %v3515_v47, %v1412_v0  ;;  %v4105_v47 = vld [vmem:[#allocation67_spill] sm:$0xff] }
 0x400   : > { %v1411_v36 = vadd.f32 %v4105_v47, %v1059_v4  ;;  %v4114_v55 = vld [vmem:[#allocation55_spill] sm:$0xff]  ;;  %v4121_v4 = vld [vmem:[#allocation53_spill] sm:$0xff] }
 0x402   : > { %v1966_v63 = vpop.permute.xlu0 %1965  ;;  %v1731_v34 = vadd.f32 %v3528_v10, %v1411_v36  ;;  %v4122_v36 = vld [vmem:[#allocation58_spill] sm:$0xff] }
 0x403   : > { %v1974_v18 = vpop.permute.xlu2 %1973  ;;  %v1958_v39 = vpop.permute.xlu1 %1957  ;;  %v2052_v17 = vadd.f32 %v1966_v63, %v1732_v14  ;;  %v4118_v14 = vld [vmem:[#allocation50_spill] sm:$0xff] }
 0x404   : > { %v2056_v15 = vadd.f32 %v1974_v18, %v3571_v8  ;;  %v2048_v37 = vadd.f32 %v1958_v39, %v1728_v52  ;;  %v4106_v8 = vld [vmem:[#allocation76_spill] sm:$0xff] }
 0x405   : > { %2085 = vst.msk [vmem:[%s3712_s4 + $0x48] sm:$0xff] %vm2075_vm0, %v2052_v17  ;;  %v1415_v45 = vadd.f32 %v4106_v8, %v1063_v27  ;;  %v4120_v17 = vld [vmem:[#allocation60_spill] sm:$0xff] }
 0x406   : > { %2089 = vst.msk [vmem:[%s3712_s4 + $0x68] sm:$0xff] %vm2075_vm0, %v2056_v15  ;;  %v4119_v15 = vld [vmem:[#allocation15_spill] sm:$0xff] }
 0x407   : > { %2081 = vst.msk [vmem:[%s3712_s4 + $0x28] sm:$0xff] %vm2075_vm0, %v2048_v37  ;;  %v1735_v42 = vadd.f32 %v3524_v26, %v1415_v45  ;;  %v4108_v26 = vld [vmem:[#allocation70_spill] sm:$0xff]  ;;  %v4123_v45 = vld [vmem:[#allocation56_spill] sm:$0xff] }
 0x408   : > { %v1414_v10 = vadd.f32 %v4108_v26, %v1062_v13 }
 0x40a   : > { %v1972_v60 = vpop.permute.xlu0 %1971 }
 0x40b   : > { %v1980_v43 = vpop.permute.xlu2 %1979  ;;  %v1964_v57 = vpop.permute.xlu1 %1963  ;;  %v2055_v25 = vadd.f32 %v1972_v60, %v1735_v42 }
 0x40c   : > { %v2059_v40 = vadd.f32 %v1980_v43, %v3588_v41  ;;  %v2051_v2 = vadd.f32 %v1964_v57, %v1731_v34  ;;  %v1734_v41 = vadd.f32 %v3540_v61, %v1414_v10  ;;  %v4110_v61 = vld [vmem:[#allocation72_spill] sm:$0xff]  ;;  %v4124_v43 = vld [vmem:[#allocation22_spill] sm:$0xff] }
 0x40d   : > { %2088 = vst.msk [vmem:[%s3712_s4 + $0x60] sm:$0xff] %vm2075_vm0, %v2055_v25  ;;  %v1417_v33 = vadd.f32 %v4110_v61, %v1065_v48 }
 0x40e   : > { %2092 = vst.msk [vmem:[%s3712_s4 + $0x80] sm:$0xff] %vm2075_vm0, %v2059_v40 }
 0x40f   : > { %2084 = vst.msk [vmem:[%s3712_s4 + $0x40] sm:$0xff] %vm2075_vm0, %v2051_v2 }
 0x412   : > { %v1978_v21 = vpop.permute.xlu0 %1977 }
 0x413   : > { %v1986_v50 = vpop.permute.xlu2 %1985  ;;  %v1970_v19 = vpop.permute.xlu1 %1969  ;;  %v2058_v49 = vadd.f32 %v1978_v21, %v3536_v16 }
 0x414   : > { %v2062_v53 = vadd.f32 %v1986_v50, %v3605_v20  ;;  %v2054_v62 = vadd.f32 %v1970_v19, %v1734_v41  ;;  %v1737_v20 = vadd.f32 %v3553_v32, %v1417_v33  ;;  %v4113_v32 = vld [vmem:[#allocation61_spill] sm:$0xff] }
 0x415   : > { %2091 = vst.msk [vmem:[%s3712_s4 + $0x78] sm:$0xff] %vm2075_vm0, %v2058_v49 }
 0x416   : > { %2095 = vst.msk [vmem:[%s3712_s4 + $0x98] sm:$0xff] %vm2075_vm0, %v2062_v53 }
 0x417   : > { %2087 = vst.msk [vmem:[%s3712_s4 + $0x58] sm:$0xff] %vm2075_vm0, %v2054_v62 }
 0x41a   : > { %v1984_v28 = vpop.permute.xlu0 %1983 }
 0x41b   : > { %v1992_v6 = vpop.permute.xlu2 %1991  ;;  %v1976_v16 = vpop.permute.xlu1 %1975  ;;  %v2061_v24 = vadd.f32 %v1984_v28, %v4112_v44 }
 0x41c   : > { %v2065_v9 = vadd.f32 %v1992_v6, %v4111_v29  ;;  %v2057_v46 = vadd.f32 %v1976_v16, %v1737_v20 }
 0x41d   : > { %2094 = vst.msk [vmem:[%s3712_s4 + $0x90] sm:$0xff] %vm2075_vm0, %v2061_v24 }
 0x41e   : > { %2098 = vst.msk [vmem:[%s3712_s4 + $0xb0] sm:$0xff] %vm2075_vm0, %v2065_v9 }
 0x41f   : > { %2090 = vst.msk [vmem:[%s3712_s4 + $0x70] sm:$0xff] %vm2075_vm0, %v2057_v46 }
 0x422   : > { %v1990_v5 = vpop.permute.xlu0 %1989 }
 0x423   : > { %v1998_v23 = vpop.permute.xlu2 %1997  ;;  %v1982_v1 = vpop.permute.xlu1 %1981  ;;  %v2064_v31 = vadd.f32 %v1990_v5, %v4115_v7 }
 0x424   : > { %v2068_v22 = vadd.f32 %v1998_v23, %v4113_v32  ;;  %v2060_v56 = vadd.f32 %v1982_v1, %v4114_v55 }
 0x425   : > { %2097 = vst.msk [vmem:[%s3712_s4 + $0xa8] sm:$0xff] %vm2075_vm0, %v2064_v31 }
 0x426   : > { %2101 = vst.msk [vmem:[%s3712_s4 + $0xc8] sm:$0xff] %vm2075_vm0, %v2068_v22 }
 0x427   : > { %2093 = vst.msk [vmem:[%s3712_s4 + $0x88] sm:$0xff] %vm2075_vm0, %v2060_v56 }
 0x42a   : > { %v1996_v3 = vpop.permute.xlu0 %1995 }
 0x42b   : > { %v2004_v12 = vpop.permute.xlu2 %2003  ;;  %v1988_v51 = vpop.permute.xlu1 %1987  ;;  %v2067_v52 = vadd.f32 %v1996_v3, %v4118_v14 }
 0x42c   : > { %v2071_v54 = vadd.f32 %v2004_v12, %v4116_v59  ;;  %v2063_v0 = vadd.f32 %v1988_v51, %v4117_v38 }
 0x42d   : > { %2100 = vst.msk [vmem:[%s3712_s4 + $0xc0] sm:$0xff] %vm2075_vm0, %v2067_v52 }
 0x42e   : > { %2104 = vst.msk [vmem:[%s3712_s4 + $0xe0] sm:$0xff] %vm2075_vm0, %v2071_v54 }
 0x42f   : > { %2096 = vst.msk [vmem:[%s3712_s4 + $0xa0] sm:$0xff] %vm2075_vm0, %v2063_v0 }
 0x432   : > { %v2002_v37 = vpop.permute.xlu0 %2001 }
 0x433   : > { %v2010_v18 = vpop.permute.xlu2 %2009  ;;  %v1994_v63 = vpop.permute.xlu1 %1993  ;;  %v2070_v11 = vadd.f32 %v2002_v37, %v4121_v4 }
 0x434   : > { %v2074_v39 = vadd.f32 %v2010_v18, %v4119_v15  ;;  %v2066_v30 = vadd.f32 %v1994_v63, %v4120_v17 }
 0x435   : > { %2103 = vst.msk [vmem:[%s3712_s4 + $0xd8] sm:$0xff] %vm2075_vm0, %v2070_v11 }
 0x436   : > { %2107 = vst.msk [vmem:[%s3712_s4 + $0xf8] sm:$0xff] %vm2075_vm0, %v2074_v39 }
 0x437   : > { %2099 = vst.msk [vmem:[%s3712_s4 + $0xb8] sm:$0xff] %vm2075_vm0, %v2066_v30 }
 0x43a   : > { %v2008_v47 = vpop.permute.xlu0 %2007 }
 0x43b   : > { %v2000_v27 = vpop.permute.xlu1 %1999  ;;  %v2073_v42 = vadd.f32 %v2008_v47, %v4123_v45 }
 0x43c   : > { %v2069_v8 = vadd.f32 %v2000_v27, %v4122_v36 }
 0x43d   : > { %2106 = vst.msk [vmem:[%s3712_s4 + $0xf0] sm:$0xff] %vm2075_vm0, %v2073_v42 }
 0x43e   : > { %2102 = vst.msk [vmem:[%s3712_s4 + $0xd0] sm:$0xff] %vm2075_vm0, %v2069_v8 }
 0x443   : > { %v2006_v34 = vpop.permute.xlu1 %2005 }
 0x444   : > { %v2072_v40 = vadd.f32 %v2006_v34, %v4124_v43 }
 0x446   : > { %2105 = vst.msk [vmem:[%s3712_s4 + $0xe8] sm:$0xff] %vm2075_vm0, %v2072_v40 }
 0x447 PF: > { %s13_s12 = sadd.s32 1, %s2453_s12  }
 0x448   : > { %p10_p4 = scmp.ge.s32.totalorder %s13_s12, 4  }
 0x44a   :  { %12 = sbr.rel (!%p10_p4) target bundleno = 1 (0x1), region = 68 }

</bundles_post_ra>
